<compile_context>
chip_gen: v5e
topology: v5e:2x2
jax: 0.10.0
libtpu: 0.0.40
codegen_flags: <defaults>
</compile_context>

<pallas_src>
import jax
import jax.numpy as jnp
from jax import lax
from jax.experimental import pallas as pl
from jax.experimental.pallas import tpu as pltpu


def _lstm_ln_kernel(gx_ref, whh_ref, ln_ref, out_ref):
    """Single-invocation kernel: full LSTM recurrence + fused LayerNorm.

    gx_ref:  (T, B, 4H) f32   precomputed x @ W_ih^T + (b_ih + b_hh), time-major
    whh_ref: (H, 4H)    bf16  hidden->gates weights (transposed)
    ln_ref:  (2, H)     f32   row 0 = gamma, row 1 = beta
    out_ref: (T, B, H)        normalized hidden states (time-major)
    """
    T, B, _ = gx_ref.shape
    H = whh_ref.shape[0]

    whh = whh_ref[...]                 # (H, 4H) bf16, hoisted out of the loop
    gamma = ln_ref[0:1, :]             # (1, H)
    beta = ln_ref[1:2, :]              # (1, H)

    def step(t, carry):
        h, c = carry                   # f32 (B, H)
        # Only the tiny recurrent matmul sits on the serial chain (bf16 MXU,
        # f32 accumulate).
        gates = gx_ref[t] + jnp.dot(h.astype(jnp.bfloat16), whh,
                                    preferred_element_type=jnp.float32)
        # PyTorch gate order: i, f, g, o
        i = jax.nn.sigmoid(gates[:, 0 * H:1 * H])
        f = jax.nn.sigmoid(gates[:, 1 * H:2 * H])
        g = jnp.tanh(gates[:, 2 * H:3 * H])
        o = jax.nn.sigmoid(gates[:, 3 * H:4 * H])

        c_new = f * c + i * g
        h_new = o * jnp.tanh(c_new)

        # Fused LayerNorm over hidden dim (eps matches nn.LayerNorm default).
        mean = jnp.mean(h_new, axis=-1, keepdims=True)
        var = jnp.mean((h_new - mean) * (h_new - mean), axis=-1, keepdims=True)
        y = (h_new - mean) * lax.rsqrt(var + 1e-5)
        y = y * gamma + beta

        out_ref[t] = y.astype(out_ref.dtype)   # VMEM store; HBM writeback is
        return (h_new, c_new)                  # one DMA when the step retires.

    h0 = jnp.zeros((B, H), jnp.float32)
    c0 = jnp.zeros((B, H), jnp.float32)
    _ = lax.fori_loop(0, T, step, (h0, c0), unroll=True)


def gps_temporal_branch(x, w_ih, w_hh, b_ih, b_hh, gamma, beta):
    """x: [B, T, D] (PyTorch batch_first).  Returns [B, T, H]."""
    B, T, D = x.shape
    H = w_hh.shape[1]

    # Non-recurrent phase: one large MXU-friendly GEMM for the input
    # projection; dot_general absorbs the [B,T,D] -> [T,B,4H] layout change.
    gx = jnp.einsum(
        "btd,gd->tbg",
        x.astype(jnp.bfloat16), w_ih.astype(jnp.bfloat16),
        preferred_element_type=jnp.float32,
    ) + (b_ih + b_hh).astype(jnp.float32)                       # (T, B, 4H)

    whh_t = jnp.transpose(w_hh, (1, 0)).astype(jnp.bfloat16)    # (H, 4H)
    ln = jnp.stack([gamma, beta]).astype(jnp.float32)           # (2, H)

    cost = pl.CostEstimate(
        flops=2 * T * B * H * 4 * H,
        transcendentals=5 * T * B * H + T * B,
        bytes_accessed=gx.size * 4 + whh_t.size * 2 + ln.size * 4
        + T * B * H * x.dtype.itemsize,
    )

    out_tm = pl.pallas_call(
        _lstm_ln_kernel,
        out_shape=jax.ShapeDtypeStruct((T, B, H), x.dtype),
        grid_spec=pltpu.PrefetchScalarGridSpec(
            num_scalar_prefetch=0,
            grid=(1,),
            in_specs=[
                pl.BlockSpec((T, B, 4 * H), lambda i: (0, 0, 0)),  # gates_x
                pl.BlockSpec((H, 4 * H), lambda i: (0, 0)),        # W_hh^T
                pl.BlockSpec((2, H), lambda i: (0, 0)),            # gamma/beta
            ],
            out_specs=pl.BlockSpec((T, B, H), lambda i: (0, 0, 0)),
        ),
        compiler_params=pltpu.CompilerParams(
            dimension_semantics=("arbitrary",),  # sequential recurrence inside
        ),
        cost_estimate=cost,
    )(gx, whh_t, ln)

    return jnp.transpose(out_tm, (1, 0, 2))                      # [B, T, H]


def _reference(x, w_ih, w_hh, b_ih, b_hh, gamma, beta):
    """Pure-JAX f32 reference (PyTorch LSTM + LayerNorm semantics, eval mode)."""
    B, T, D = x.shape
    H = w_hh.shape[1]
    b = b_ih + b_hh

    def step(carry, x_t):
        h, c = carry
        gates = x_t @ w_ih.T + h @ w_hh.T + b
        i = jax.nn.sigmoid(gates[:, 0 * H:1 * H])
        f = jax.nn.sigmoid(gates[:, 1 * H:2 * H])
        g = jnp.tanh(gates[:, 2 * H:3 * H])
        o = jax.nn.sigmoid(gates[:, 3 * H:4 * H])
        c = f * c + i * g
        h = o * jnp.tanh(c)
        return (h, c), h

    h0 = jnp.zeros((B, H), jnp.float32)
    c0 = jnp.zeros((B, H), jnp.float32)
    _, hs = lax.scan(step, (h0, c0), jnp.transpose(x, (1, 0, 2)))
    hs = jnp.transpose(hs, (1, 0, 2))                            # [B, T, H]
    mean = jnp.mean(hs, axis=-1, keepdims=True)
    var = jnp.mean((hs - mean) ** 2, axis=-1, keepdims=True)
    return (hs - mean) * lax.rsqrt(var + 1e-5) * gamma + beta


if __name__ == "__main__":
    # Small, forward-consistent shapes: batch=2, seq=8, input=hidden=32.
    B, T, D, H = 2, 8, 32, 32

    key = jax.random.PRNGKey(0)
    kx, k1, k2, k3, k4 = jax.random.split(key, 5)

    # PyTorch LSTM init: U(-1/sqrt(H), 1/sqrt(H)); LayerNorm: gamma=1, beta=0.
    bound = 1.0 / (H ** 0.5)
    x = jax.random.normal(kx, (B, T, D), jnp.float32)
    w_ih = jax.random.uniform(k1, (4 * H, D), jnp.float32, -bound, bound)
    w_hh = jax.random.uniform(k2, (4 * H, H), jnp.float32, -bound, bound)
    b_ih = jax.random.uniform(k3, (4 * H,), jnp.float32, -bound, bound)
    b_hh = jax.random.uniform(k4, (4 * H,), jnp.float32, -bound, bound)
    gamma = jnp.ones((H,), jnp.float32)
    beta = jnp.zeros((H,), jnp.float32)

    out = gps_temporal_branch(x, w_ih, w_hh, b_ih, b_hh, gamma, beta)
    out = jax.block_until_ready(out)

    ref = _reference(x, w_ih, w_hh, b_ih, b_hh, gamma, beta)
    assert out.shape == (B, T, H)
    # Tolerance widened vs. the pure-f32 version because the MXU operands are
    # bf16 (f32 accumulation); LayerNorm amplifies absolute error by ~1/std(h).
    assert jnp.allclose(out, ref, atol=5e-2, rtol=5e-2), "mismatch vs reference"

    print("KERNEL_OK")
</pallas_src>

<mosaic_0001>
module attributes {stable_mosaic.version = 11 : i64} {
  func.func @_lstm_ln_kernel(%arg0: i32, %arg1: memref<8x2x128xf32, #tpu.memory_space<vmem>>, %arg2: memref<32x128xbf16, #tpu.memory_space<vmem>>, %arg3: memref<2x32xf32, #tpu.memory_space<vmem>>, %arg4: memref<8x2x32xf32, #tpu.memory_space<vmem>>) attributes {dimension_semantics = [#tpu.dimension_semantics<arbitrary>], iteration_bounds = array<i64: 1>, scalar_prefetch = 0 : i64, scratch_operands = 0 : i64, tpu.core_type = #tpu.core_type<tc>, window_params = [{pipeline_mode = #tpu.pipeline_mode<synchronous>, transform_indices = @transform_0, window_bounds = array<i64: 8, 2, 128>}, {pipeline_mode = #tpu.pipeline_mode<synchronous>, transform_indices = @transform_1, window_bounds = array<i64: 32, 128>}, {pipeline_mode = #tpu.pipeline_mode<synchronous>, transform_indices = @transform_2, window_bounds = array<i64: 2, 32>}, {pipeline_mode = #tpu.pipeline_mode<synchronous>, transform_indices = @transform_3, window_bounds = array<i64: 8, 2, 32>}]} {
    %c0 = arith.constant 0 : index
    %c0_0 = arith.constant 0 : index
    %0 = vector.load %arg2[%c0, %c0_0] : memref<32x128xbf16, #tpu.memory_space<vmem>>, vector<32x128xbf16>
    %c0_1 = arith.constant 0 : index
    %c0_2 = arith.constant 0 : index
    %1 = vector.load %arg3[%c0_1, %c0_2] : memref<2x32xf32, #tpu.memory_space<vmem>>, vector<1x32xf32>
    %c1 = arith.constant 1 : index
    %c0_3 = arith.constant 0 : index
    %2 = vector.load %arg3[%c1, %c0_3] : memref<2x32xf32, #tpu.memory_space<vmem>>, vector<1x32xf32>
    %cst = arith.constant 0.000000e+00 : f32
    %3 = vector.broadcast %cst : f32 to vector<2x32xf32>
    %cst_4 = arith.constant 0.000000e+00 : f32
    %4 = vector.broadcast %cst_4 : f32 to vector<2x32xf32>
    %c0_i32 = arith.constant 0 : i32
    %5 = arith.index_cast %c0_i32 : i32 to index
    %c0_5 = arith.constant 0 : index
    %c0_6 = arith.constant 0 : index
    %6 = vector.load %arg1[%5, %c0_5, %c0_6] : memref<8x2x128xf32, #tpu.memory_space<vmem>>, vector<1x2x128xf32>
    %7 = vector.shape_cast %6 : vector<1x2x128xf32> to vector<2x128xf32>
    %8 = arith.truncf %3 : vector<2x32xf32> to vector<2x32xbf16>
    %cst_7 = arith.constant dense<0.000000e+00> : vector<2x128xf32>
    %9 = tpu.matmul %8, %0, %cst_7 {dimension_numbers = #tpu.dot_dimension_numbers<[1], [0], [0], [1], [0, 0, 1, 1], [], []>} : vector<2x32xbf16>, vector<32x128xbf16>, vector<2x128xf32> -> vector<2x128xf32>
    %10 = arith.addf %7, %9 : vector<2x128xf32>
    %11 = vector.extract_strided_slice %10 {offsets = [0, 0], sizes = [2, 32], strides = [1, 1]} : vector<2x128xf32> to vector<2x32xf32>
    %12 = arith.negf %11 : vector<2x32xf32>
    %13 = math.exp %12 : vector<2x32xf32>
    %cst_8 = arith.constant 1.000000e+00 : f32
    %14 = vector.broadcast %cst_8 : f32 to vector<2x32xf32>
    %15 = arith.addf %14, %13 : vector<2x32xf32>
    %16 = arith.divf %14, %15 : vector<2x32xf32>
    %17 = vector.extract_strided_slice %10 {offsets = [0, 32], sizes = [2, 32], strides = [1, 1]} : vector<2x128xf32> to vector<2x32xf32>
    %18 = arith.negf %17 : vector<2x32xf32>
    %19 = math.exp %18 : vector<2x32xf32>
    %cst_9 = arith.constant 1.000000e+00 : f32
    %20 = vector.broadcast %cst_9 : f32 to vector<2x32xf32>
    %21 = arith.addf %20, %19 : vector<2x32xf32>
    %22 = arith.divf %20, %21 : vector<2x32xf32>
    %23 = vector.extract_strided_slice %10 {offsets = [0, 64], sizes = [2, 32], strides = [1, 1]} : vector<2x128xf32> to vector<2x32xf32>
    %24 = math.tanh %23 : vector<2x32xf32>
    %25 = vector.extract_strided_slice %10 {offsets = [0, 96], sizes = [2, 32], strides = [1, 1]} : vector<2x128xf32> to vector<2x32xf32>
    %26 = arith.negf %25 : vector<2x32xf32>
    %27 = math.exp %26 : vector<2x32xf32>
    %cst_10 = arith.constant 1.000000e+00 : f32
    %28 = vector.broadcast %cst_10 : f32 to vector<2x32xf32>
    %29 = arith.addf %28, %27 : vector<2x32xf32>
    %30 = arith.divf %28, %29 : vector<2x32xf32>
    %31 = arith.mulf %22, %4 : vector<2x32xf32>
    %32 = arith.mulf %16, %24 : vector<2x32xf32>
    %33 = arith.addf %31, %32 : vector<2x32xf32>
    %34 = math.tanh %33 : vector<2x32xf32>
    %35 = arith.mulf %30, %34 : vector<2x32xf32>
    %cst_11 = arith.constant dense<0.000000e+00> : vector<2xf32>
    %36 = vector.multi_reduction <add>, %35, %cst_11 [1] : vector<2x32xf32> to vector<2xf32>
    %37 = vector.shape_cast %36 : vector<2xf32> to vector<2x1xf32>
    %cst_12 = arith.constant 3.200000e+01 : f32
    %38 = vector.broadcast %cst_12 : f32 to vector<2x1xf32>
    %39 = arith.divf %37, %38 : vector<2x1xf32>
    %40 = vector.broadcast %39 : vector<2x1xf32> to vector<2x32xf32>
    %41 = arith.subf %35, %40 : vector<2x32xf32>
    %42 = vector.broadcast %39 : vector<2x1xf32> to vector<2x32xf32>
    %43 = arith.subf %35, %42 : vector<2x32xf32>
    %44 = arith.mulf %41, %43 : vector<2x32xf32>
    %cst_13 = arith.constant dense<0.000000e+00> : vector<2xf32>
    %45 = vector.multi_reduction <add>, %44, %cst_13 [1] : vector<2x32xf32> to vector<2xf32>
    %46 = vector.shape_cast %45 : vector<2xf32> to vector<2x1xf32>
    %cst_14 = arith.constant 3.200000e+01 : f32
    %47 = vector.broadcast %cst_14 : f32 to vector<2x1xf32>
    %48 = arith.divf %46, %47 : vector<2x1xf32>
    %49 = vector.broadcast %39 : vector<2x1xf32> to vector<2x32xf32>
    %50 = arith.subf %35, %49 : vector<2x32xf32>
    %cst_15 = arith.constant 9.99999974E-6 : f32
    %51 = vector.broadcast %cst_15 : f32 to vector<2x1xf32>
    %52 = arith.addf %48, %51 : vector<2x1xf32>
    %53 = math.rsqrt %52 : vector<2x1xf32>
    %54 = vector.broadcast %53 : vector<2x1xf32> to vector<2x32xf32>
    %55 = arith.mulf %50, %54 : vector<2x32xf32>
    %56 = vector.broadcast %1 : vector<1x32xf32> to vector<2x32xf32>
    %57 = arith.mulf %55, %56 : vector<2x32xf32>
    %58 = vector.broadcast %2 : vector<1x32xf32> to vector<2x32xf32>
    %59 = arith.addf %57, %58 : vector<2x32xf32>
    %60 = arith.index_cast %c0_i32 : i32 to index
    %c0_16 = arith.constant 0 : index
    %c0_17 = arith.constant 0 : index
    %61 = vector.load %arg4[%60, %c0_16, %c0_17] : memref<8x2x32xf32, #tpu.memory_space<vmem>>, vector<1x2x32xf32>
    %62 = vector.shape_cast %61 : vector<1x2x32xf32> to vector<2x32xf32>
    %63 = vector.shape_cast %59 : vector<2x32xf32> to vector<1x2x32xf32>
    tpu.vector_store %arg4[%60, %c0_16, %c0_17], %63 {strides = array<i32>} : memref<8x2x32xf32, #tpu.memory_space<vmem>>, vector<1x2x32xf32>,
    %c1_i32 = arith.constant 1 : i32
    %64 = arith.index_cast %c1_i32 : i32 to index
    %c0_18 = arith.constant 0 : index
    %c0_19 = arith.constant 0 : index
    %65 = vector.load %arg1[%64, %c0_18, %c0_19] : memref<8x2x128xf32, #tpu.memory_space<vmem>>, vector<1x2x128xf32>
    %66 = vector.shape_cast %65 : vector<1x2x128xf32> to vector<2x128xf32>
    %67 = arith.truncf %35 : vector<2x32xf32> to vector<2x32xbf16>
    %cst_20 = arith.constant dense<0.000000e+00> : vector<2x128xf32>
    %68 = tpu.matmul %67, %0, %cst_20 {dimension_numbers = #tpu.dot_dimension_numbers<[1], [0], [0], [1], [0, 0, 1, 1], [], []>} : vector<2x32xbf16>, vector<32x128xbf16>, vector<2x128xf32> -> vector<2x128xf32>
    %69 = arith.addf %66, %68 : vector<2x128xf32>
    %70 = vector.extract_strided_slice %69 {offsets = [0, 0], sizes = [2, 32], strides = [1, 1]} : vector<2x128xf32> to vector<2x32xf32>
    %71 = arith.negf %70 : vector<2x32xf32>
    %72 = math.exp %71 : vector<2x32xf32>
    %cst_21 = arith.constant 1.000000e+00 : f32
    %73 = vector.broadcast %cst_21 : f32 to vector<2x32xf32>
    %74 = arith.addf %73, %72 : vector<2x32xf32>
    %75 = arith.divf %73, %74 : vector<2x32xf32>
    %76 = vector.extract_strided_slice %69 {offsets = [0, 32], sizes = [2, 32], strides = [1, 1]} : vector<2x128xf32> to vector<2x32xf32>
    %77 = arith.negf %76 : vector<2x32xf32>
    %78 = math.exp %77 : vector<2x32xf32>
    %cst_22 = arith.constant 1.000000e+00 : f32
    %79 = vector.broadcast %cst_22 : f32 to vector<2x32xf32>
    %80 = arith.addf %79, %78 : vector<2x32xf32>
    %81 = arith.divf %79, %80 : vector<2x32xf32>
    %82 = vector.extract_strided_slice %69 {offsets = [0, 64], sizes = [2, 32], strides = [1, 1]} : vector<2x128xf32> to vector<2x32xf32>
    %83 = math.tanh %82 : vector<2x32xf32>
    %84 = vector.extract_strided_slice %69 {offsets = [0, 96], sizes = [2, 32], strides = [1, 1]} : vector<2x128xf32> to vector<2x32xf32>
    %85 = arith.negf %84 : vector<2x32xf32>
    %86 = math.exp %85 : vector<2x32xf32>
    %cst_23 = arith.constant 1.000000e+00 : f32
    %87 = vector.broadcast %cst_23 : f32 to vector<2x32xf32>
    %88 = arith.addf %87, %86 : vector<2x32xf32>
    %89 = arith.divf %87, %88 : vector<2x32xf32>
    %90 = arith.mulf %81, %33 : vector<2x32xf32>
    %91 = arith.mulf %75, %83 : vector<2x32xf32>
    %92 = arith.addf %90, %91 : vector<2x32xf32>
    %93 = math.tanh %92 : vector<2x32xf32>
    %94 = arith.mulf %89, %93 : vector<2x32xf32>
    %cst_24 = arith.constant dense<0.000000e+00> : vector<2xf32>
    %95 = vector.multi_reduction <add>, %94, %cst_24 [1] : vector<2x32xf32> to vector<2xf32>
    %96 = vector.shape_cast %95 : vector<2xf32> to vector<2x1xf32>
    %cst_25 = arith.constant 3.200000e+01 : f32
    %97 = vector.broadcast %cst_25 : f32 to vector<2x1xf32>
    %98 = arith.divf %96, %97 : vector<2x1xf32>
    %99 = vector.broadcast %98 : vector<2x1xf32> to vector<2x32xf32>
    %100 = arith.subf %94, %99 : vector<2x32xf32>
    %101 = vector.broadcast %98 : vector<2x1xf32> to vector<2x32xf32>
    %102 = arith.subf %94, %101 : vector<2x32xf32>
    %103 = arith.mulf %100, %102 : vector<2x32xf32>
    %cst_26 = arith.constant dense<0.000000e+00> : vector<2xf32>
    %104 = vector.multi_reduction <add>, %103, %cst_26 [1] : vector<2x32xf32> to vector<2xf32>
    %105 = vector.shape_cast %104 : vector<2xf32> to vector<2x1xf32>
    %cst_27 = arith.constant 3.200000e+01 : f32
    %106 = vector.broadcast %cst_27 : f32 to vector<2x1xf32>
    %107 = arith.divf %105, %106 : vector<2x1xf32>
    %108 = vector.broadcast %98 : vector<2x1xf32> to vector<2x32xf32>
    %109 = arith.subf %94, %108 : vector<2x32xf32>
    %cst_28 = arith.constant 9.99999974E-6 : f32
    %110 = vector.broadcast %cst_28 : f32 to vector<2x1xf32>
    %111 = arith.addf %107, %110 : vector<2x1xf32>
    %112 = math.rsqrt %111 : vector<2x1xf32>
    %113 = vector.broadcast %112 : vector<2x1xf32> to vector<2x32xf32>
    %114 = arith.mulf %109, %113 : vector<2x32xf32>
    %115 = vector.broadcast %1 : vector<1x32xf32> to vector<2x32xf32>
    %116 = arith.mulf %114, %115 : vector<2x32xf32>
    %117 = vector.broadcast %2 : vector<1x32xf32> to vector<2x32xf32>
    %118 = arith.addf %116, %117 : vector<2x32xf32>
    %119 = arith.index_cast %c1_i32 : i32 to index
    %c0_29 = arith.constant 0 : index
    %c0_30 = arith.constant 0 : index
    %120 = vector.load %arg4[%119, %c0_29, %c0_30] : memref<8x2x32xf32, #tpu.memory_space<vmem>>, vector<1x2x32xf32>
    %121 = vector.shape_cast %120 : vector<1x2x32xf32> to vector<2x32xf32>
    %122 = vector.shape_cast %118 : vector<2x32xf32> to vector<1x2x32xf32>
    tpu.vector_store %arg4[%119, %c0_29, %c0_30], %122 {strides = array<i32>} : memref<8x2x32xf32, #tpu.memory_space<vmem>>, vector<1x2x32xf32>,
    %c2_i32 = arith.constant 2 : i32
    %123 = arith.index_cast %c2_i32 : i32 to index
    %c0_31 = arith.constant 0 : index
    %c0_32 = arith.constant 0 : index
    %124 = vector.load %arg1[%123, %c0_31, %c0_32] : memref<8x2x128xf32, #tpu.memory_space<vmem>>, vector<1x2x128xf32>
    %125 = vector.shape_cast %124 : vector<1x2x128xf32> to vector<2x128xf32>
    %126 = arith.truncf %94 : vector<2x32xf32> to vector<2x32xbf16>
    %cst_33 = arith.constant dense<0.000000e+00> : vector<2x128xf32>
    %127 = tpu.matmul %126, %0, %cst_33 {dimension_numbers = #tpu.dot_dimension_numbers<[1], [0], [0], [1], [0, 0, 1, 1], [], []>} : vector<2x32xbf16>, vector<32x128xbf16>, vector<2x128xf32> -> vector<2x128xf32>
    %128 = arith.addf %125, %127 : vector<2x128xf32>
    %129 = vector.extract_strided_slice %128 {offsets = [0, 0], sizes = [2, 32], strides = [1, 1]} : vector<2x128xf32> to vector<2x32xf32>
    %130 = arith.negf %129 : vector<2x32xf32>
    %131 = math.exp %130 : vector<2x32xf32>
    %cst_34 = arith.constant 1.000000e+00 : f32
    %132 = vector.broadcast %cst_34 : f32 to vector<2x32xf32>
    %133 = arith.addf %132, %131 : vector<2x32xf32>
    %134 = arith.divf %132, %133 : vector<2x32xf32>
    %135 = vector.extract_strided_slice %128 {offsets = [0, 32], sizes = [2, 32], strides = [1, 1]} : vector<2x128xf32> to vector<2x32xf32>
    %136 = arith.negf %135 : vector<2x32xf32>
    %137 = math.exp %136 : vector<2x32xf32>
    %cst_35 = arith.constant 1.000000e+00 : f32
    %138 = vector.broadcast %cst_35 : f32 to vector<2x32xf32>
    %139 = arith.addf %138, %137 : vector<2x32xf32>
    %140 = arith.divf %138, %139 : vector<2x32xf32>
    %141 = vector.extract_strided_slice %128 {offsets = [0, 64], sizes = [2, 32], strides = [1, 1]} : vector<2x128xf32> to vector<2x32xf32>
    %142 = math.tanh %141 : vector<2x32xf32>
    %143 = vector.extract_strided_slice %128 {offsets = [0, 96], sizes = [2, 32], strides = [1, 1]} : vector<2x128xf32> to vector<2x32xf32>
    %144 = arith.negf %143 : vector<2x32xf32>
    %145 = math.exp %144 : vector<2x32xf32>
    %cst_36 = arith.constant 1.000000e+00 : f32
    %146 = vector.broadcast %cst_36 : f32 to vector<2x32xf32>
    %147 = arith.addf %146, %145 : vector<2x32xf32>
    %148 = arith.divf %146, %147 : vector<2x32xf32>
    %149 = arith.mulf %140, %92 : vector<2x32xf32>
    %150 = arith.mulf %134, %142 : vector<2x32xf32>
    %151 = arith.addf %149, %150 : vector<2x32xf32>
    %152 = math.tanh %151 : vector<2x32xf32>
    %153 = arith.mulf %148, %152 : vector<2x32xf32>
    %cst_37 = arith.constant dense<0.000000e+00> : vector<2xf32>
    %154 = vector.multi_reduction <add>, %153, %cst_37 [1] : vector<2x32xf32> to vector<2xf32>
    %155 = vector.shape_cast %154 : vector<2xf32> to vector<2x1xf32>
    %cst_38 = arith.constant 3.200000e+01 : f32
    %156 = vector.broadcast %cst_38 : f32 to vector<2x1xf32>
    %157 = arith.divf %155, %156 : vector<2x1xf32>
    %158 = vector.broadcast %157 : vector<2x1xf32> to vector<2x32xf32>
    %159 = arith.subf %153, %158 : vector<2x32xf32>
    %160 = vector.broadcast %157 : vector<2x1xf32> to vector<2x32xf32>
    %161 = arith.subf %153, %160 : vector<2x32xf32>
    %162 = arith.mulf %159, %161 : vector<2x32xf32>
    %cst_39 = arith.constant dense<0.000000e+00> : vector<2xf32>
    %163 = vector.multi_reduction <add>, %162, %cst_39 [1] : vector<2x32xf32> to vector<2xf32>
    %164 = vector.shape_cast %163 : vector<2xf32> to vector<2x1xf32>
    %cst_40 = arith.constant 3.200000e+01 : f32
    %165 = vector.broadcast %cst_40 : f32 to vector<2x1xf32>
    %166 = arith.divf %164, %165 : vector<2x1xf32>
    %167 = vector.broadcast %157 : vector<2x1xf32> to vector<2x32xf32>
    %168 = arith.subf %153, %167 : vector<2x32xf32>
    %cst_41 = arith.constant 9.99999974E-6 : f32
    %169 = vector.broadcast %cst_41 : f32 to vector<2x1xf32>
    %170 = arith.addf %166, %169 : vector<2x1xf32>
    %171 = math.rsqrt %170 : vector<2x1xf32>
    %172 = vector.broadcast %171 : vector<2x1xf32> to vector<2x32xf32>
    %173 = arith.mulf %168, %172 : vector<2x32xf32>
    %174 = vector.broadcast %1 : vector<1x32xf32> to vector<2x32xf32>
    %175 = arith.mulf %173, %174 : vector<2x32xf32>
    %176 = vector.broadcast %2 : vector<1x32xf32> to vector<2x32xf32>
    %177 = arith.addf %175, %176 : vector<2x32xf32>
    %178 = arith.index_cast %c2_i32 : i32 to index
    %c0_42 = arith.constant 0 : index
    %c0_43 = arith.constant 0 : index
    %179 = vector.load %arg4[%178, %c0_42, %c0_43] : memref<8x2x32xf32, #tpu.memory_space<vmem>>, vector<1x2x32xf32>
    %180 = vector.shape_cast %179 : vector<1x2x32xf32> to vector<2x32xf32>
    %181 = vector.shape_cast %177 : vector<2x32xf32> to vector<1x2x32xf32>
    tpu.vector_store %arg4[%178, %c0_42, %c0_43], %181 {strides = array<i32>} : memref<8x2x32xf32, #tpu.memory_space<vmem>>, vector<1x2x32xf32>,
    %c3_i32 = arith.constant 3 : i32
    %182 = arith.index_cast %c3_i32 : i32 to index
    %c0_44 = arith.constant 0 : index
    %c0_45 = arith.constant 0 : index
    %183 = vector.load %arg1[%182, %c0_44, %c0_45] : memref<8x2x128xf32, #tpu.memory_space<vmem>>, vector<1x2x128xf32>
    %184 = vector.shape_cast %183 : vector<1x2x128xf32> to vector<2x128xf32>
    %185 = arith.truncf %153 : vector<2x32xf32> to vector<2x32xbf16>
    %cst_46 = arith.constant dense<0.000000e+00> : vector<2x128xf32>
    %186 = tpu.matmul %185, %0, %cst_46 {dimension_numbers = #tpu.dot_dimension_numbers<[1], [0], [0], [1], [0, 0, 1, 1], [], []>} : vector<2x32xbf16>, vector<32x128xbf16>, vector<2x128xf32> -> vector<2x128xf32>
    %187 = arith.addf %184, %186 : vector<2x128xf32>
    %188 = vector.extract_strided_slice %187 {offsets = [0, 0], sizes = [2, 32], strides = [1, 1]} : vector<2x128xf32> to vector<2x32xf32>
    %189 = arith.negf %188 : vector<2x32xf32>
    %190 = math.exp %189 : vector<2x32xf32>
    %cst_47 = arith.constant 1.000000e+00 : f32
    %191 = vector.broadcast %cst_47 : f32 to vector<2x32xf32>
    %192 = arith.addf %191, %190 : vector<2x32xf32>
    %193 = arith.divf %191, %192 : vector<2x32xf32>
    %194 = vector.extract_strided_slice %187 {offsets = [0, 32], sizes = [2, 32], strides = [1, 1]} : vector<2x128xf32> to vector<2x32xf32>
    %195 = arith.negf %194 : vector<2x32xf32>
    %196 = math.exp %195 : vector<2x32xf32>
    %cst_48 = arith.constant 1.000000e+00 : f32
    %197 = vector.broadcast %cst_48 : f32 to vector<2x32xf32>
    %198 = arith.addf %197, %196 : vector<2x32xf32>
    %199 = arith.divf %197, %198 : vector<2x32xf32>
    %200 = vector.extract_strided_slice %187 {offsets = [0, 64], sizes = [2, 32], strides = [1, 1]} : vector<2x128xf32> to vector<2x32xf32>
    %201 = math.tanh %200 : vector<2x32xf32>
    %202 = vector.extract_strided_slice %187 {offsets = [0, 96], sizes = [2, 32], strides = [1, 1]} : vector<2x128xf32> to vector<2x32xf32>
    %203 = arith.negf %202 : vector<2x32xf32>
    %204 = math.exp %203 : vector<2x32xf32>
    %cst_49 = arith.constant 1.000000e+00 : f32
    %205 = vector.broadcast %cst_49 : f32 to vector<2x32xf32>
    %206 = arith.addf %205, %204 : vector<2x32xf32>
    %207 = arith.divf %205, %206 : vector<2x32xf32>
    %208 = arith.mulf %199, %151 : vector<2x32xf32>
    %209 = arith.mulf %193, %201 : vector<2x32xf32>
    %210 = arith.addf %208, %209 : vector<2x32xf32>
    %211 = math.tanh %210 : vector<2x32xf32>
    %212 = arith.mulf %207, %211 : vector<2x32xf32>
    %cst_50 = arith.constant dense<0.000000e+00> : vector<2xf32>
    %213 = vector.multi_reduction <add>, %212, %cst_50 [1] : vector<2x32xf32> to vector<2xf32>
    %214 = vector.shape_cast %213 : vector<2xf32> to vector<2x1xf32>
    %cst_51 = arith.constant 3.200000e+01 : f32
    %215 = vector.broadcast %cst_51 : f32 to vector<2x1xf32>
    %216 = arith.divf %214, %215 : vector<2x1xf32>
    %217 = vector.broadcast %216 : vector<2x1xf32> to vector<2x32xf32>
    %218 = arith.subf %212, %217 : vector<2x32xf32>
    %219 = vector.broadcast %216 : vector<2x1xf32> to vector<2x32xf32>
    %220 = arith.subf %212, %219 : vector<2x32xf32>
    %221 = arith.mulf %218, %220 : vector<2x32xf32>
    %cst_52 = arith.constant dense<0.000000e+00> : vector<2xf32>
    %222 = vector.multi_reduction <add>, %221, %cst_52 [1] : vector<2x32xf32> to vector<2xf32>
    %223 = vector.shape_cast %222 : vector<2xf32> to vector<2x1xf32>
    %cst_53 = arith.constant 3.200000e+01 : f32
    %224 = vector.broadcast %cst_53 : f32 to vector<2x1xf32>
    %225 = arith.divf %223, %224 : vector<2x1xf32>
    %226 = vector.broadcast %216 : vector<2x1xf32> to vector<2x32xf32>
    %227 = arith.subf %212, %226 : vector<2x32xf32>
    %cst_54 = arith.constant 9.99999974E-6 : f32
    %228 = vector.broadcast %cst_54 : f32 to vector<2x1xf32>
    %229 = arith.addf %225, %228 : vector<2x1xf32>
    %230 = math.rsqrt %229 : vector<2x1xf32>
    %231 = vector.broadcast %230 : vector<2x1xf32> to vector<2x32xf32>
    %232 = arith.mulf %227, %231 : vector<2x32xf32>
    %233 = vector.broadcast %1 : vector<1x32xf32> to vector<2x32xf32>
    %234 = arith.mulf %232, %233 : vector<2x32xf32>
    %235 = vector.broadcast %2 : vector<1x32xf32> to vector<2x32xf32>
    %236 = arith.addf %234, %235 : vector<2x32xf32>
    %237 = arith.index_cast %c3_i32 : i32 to index
    %c0_55 = arith.constant 0 : index
    %c0_56 = arith.constant 0 : index
    %238 = vector.load %arg4[%237, %c0_55, %c0_56] : memref<8x2x32xf32, #tpu.memory_space<vmem>>, vector<1x2x32xf32>
    %239 = vector.shape_cast %238 : vector<1x2x32xf32> to vector<2x32xf32>
    %240 = vector.shape_cast %236 : vector<2x32xf32> to vector<1x2x32xf32>
    tpu.vector_store %arg4[%237, %c0_55, %c0_56], %240 {strides = array<i32>} : memref<8x2x32xf32, #tpu.memory_space<vmem>>, vector<1x2x32xf32>,
    %c4_i32 = arith.constant 4 : i32
    %241 = arith.index_cast %c4_i32 : i32 to index
    %c0_57 = arith.constant 0 : index
    %c0_58 = arith.constant 0 : index
    %242 = vector.load %arg1[%241, %c0_57, %c0_58] : memref<8x2x128xf32, #tpu.memory_space<vmem>>, vector<1x2x128xf32>
    %243 = vector.shape_cast %242 : vector<1x2x128xf32> to vector<2x128xf32>
    %244 = arith.truncf %212 : vector<2x32xf32> to vector<2x32xbf16>
    %cst_59 = arith.constant dense<0.000000e+00> : vector<2x128xf32>
    %245 = tpu.matmul %244, %0, %cst_59 {dimension_numbers = #tpu.dot_dimension_numbers<[1], [0], [0], [1], [0, 0, 1, 1], [], []>} : vector<2x32xbf16>, vector<32x128xbf16>, vector<2x128xf32> -> vector<2x128xf32>
    %246 = arith.addf %243, %245 : vector<2x128xf32>
    %247 = vector.extract_strided_slice %246 {offsets = [0, 0], sizes = [2, 32], strides = [1, 1]} : vector<2x128xf32> to vector<2x32xf32>
    %248 = arith.negf %247 : vector<2x32xf32>
    %249 = math.exp %248 : vector<2x32xf32>
    %cst_60 = arith.constant 1.000000e+00 : f32
    %250 = vector.broadcast %cst_60 : f32 to vector<2x32xf32>
    %251 = arith.addf %250, %249 : vector<2x32xf32>
    %252 = arith.divf %250, %251 : vector<2x32xf32>
    %253 = vector.extract_strided_slice %246 {offsets = [0, 32], sizes = [2, 32], strides = [1, 1]} : vector<2x128xf32> to vector<2x32xf32>
    %254 = arith.negf %253 : vector<2x32xf32>
    %255 = math.exp %254 : vector<2x32xf32>
    %cst_61 = arith.constant 1.000000e+00 : f32
    %256 = vector.broadcast %cst_61 : f32 to vector<2x32xf32>
    %257 = arith.addf %256, %255 : vector<2x32xf32>
    %258 = arith.divf %256, %257 : vector<2x32xf32>
    %259 = vector.extract_strided_slice %246 {offsets = [0, 64], sizes = [2, 32], strides = [1, 1]} : vector<2x128xf32> to vector<2x32xf32>
    %260 = math.tanh %259 : vector<2x32xf32>
    %261 = vector.extract_strided_slice %246 {offsets = [0, 96], sizes = [2, 32], strides = [1, 1]} : vector<2x128xf32> to vector<2x32xf32>
    %262 = arith.negf %261 : vector<2x32xf32>
    %263 = math.exp %262 : vector<2x32xf32>
    %cst_62 = arith.constant 1.000000e+00 : f32
    %264 = vector.broadcast %cst_62 : f32 to vector<2x32xf32>
    %265 = arith.addf %264, %263 : vector<2x32xf32>
    %266 = arith.divf %264, %265 : vector<2x32xf32>
    %267 = arith.mulf %258, %210 : vector<2x32xf32>
    %268 = arith.mulf %252, %260 : vector<2x32xf32>
    %269 = arith.addf %267, %268 : vector<2x32xf32>
    %270 = math.tanh %269 : vector<2x32xf32>
    %271 = arith.mulf %266, %270 : vector<2x32xf32>
    %cst_63 = arith.constant dense<0.000000e+00> : vector<2xf32>
    %272 = vector.multi_reduction <add>, %271, %cst_63 [1] : vector<2x32xf32> to vector<2xf32>
    %273 = vector.shape_cast %272 : vector<2xf32> to vector<2x1xf32>
    %cst_64 = arith.constant 3.200000e+01 : f32
    %274 = vector.broadcast %cst_64 : f32 to vector<2x1xf32>
    %275 = arith.divf %273, %274 : vector<2x1xf32>
    %276 = vector.broadcast %275 : vector<2x1xf32> to vector<2x32xf32>
    %277 = arith.subf %271, %276 : vector<2x32xf32>
    %278 = vector.broadcast %275 : vector<2x1xf32> to vector<2x32xf32>
    %279 = arith.subf %271, %278 : vector<2x32xf32>
    %280 = arith.mulf %277, %279 : vector<2x32xf32>
    %cst_65 = arith.constant dense<0.000000e+00> : vector<2xf32>
    %281 = vector.multi_reduction <add>, %280, %cst_65 [1] : vector<2x32xf32> to vector<2xf32>
    %282 = vector.shape_cast %281 : vector<2xf32> to vector<2x1xf32>
    %cst_66 = arith.constant 3.200000e+01 : f32
    %283 = vector.broadcast %cst_66 : f32 to vector<2x1xf32>
    %284 = arith.divf %282, %283 : vector<2x1xf32>
    %285 = vector.broadcast %275 : vector<2x1xf32> to vector<2x32xf32>
    %286 = arith.subf %271, %285 : vector<2x32xf32>
    %cst_67 = arith.constant 9.99999974E-6 : f32
    %287 = vector.broadcast %cst_67 : f32 to vector<2x1xf32>
    %288 = arith.addf %284, %287 : vector<2x1xf32>
    %289 = math.rsqrt %288 : vector<2x1xf32>
    %290 = vector.broadcast %289 : vector<2x1xf32> to vector<2x32xf32>
    %291 = arith.mulf %286, %290 : vector<2x32xf32>
    %292 = vector.broadcast %1 : vector<1x32xf32> to vector<2x32xf32>
    %293 = arith.mulf %291, %292 : vector<2x32xf32>
    %294 = vector.broadcast %2 : vector<1x32xf32> to vector<2x32xf32>
    %295 = arith.addf %293, %294 : vector<2x32xf32>
    %296 = arith.index_cast %c4_i32 : i32 to index
    %c0_68 = arith.constant 0 : index
    %c0_69 = arith.constant 0 : index
    %297 = vector.load %arg4[%296, %c0_68, %c0_69] : memref<8x2x32xf32, #tpu.memory_space<vmem>>, vector<1x2x32xf32>
    %298 = vector.shape_cast %297 : vector<1x2x32xf32> to vector<2x32xf32>
    %299 = vector.shape_cast %295 : vector<2x32xf32> to vector<1x2x32xf32>
    tpu.vector_store %arg4[%296, %c0_68, %c0_69], %299 {strides = array<i32>} : memref<8x2x32xf32, #tpu.memory_space<vmem>>, vector<1x2x32xf32>,
    %c5_i32 = arith.constant 5 : i32
    %300 = arith.index_cast %c5_i32 : i32 to index
    %c0_70 = arith.constant 0 : index
    %c0_71 = arith.constant 0 : index
    %301 = vector.load %arg1[%300, %c0_70, %c0_71] : memref<8x2x128xf32, #tpu.memory_space<vmem>>, vector<1x2x128xf32>
    %302 = vector.shape_cast %301 : vector<1x2x128xf32> to vector<2x128xf32>
    %303 = arith.truncf %271 : vector<2x32xf32> to vector<2x32xbf16>
    %cst_72 = arith.constant dense<0.000000e+00> : vector<2x128xf32>
    %304 = tpu.matmul %303, %0, %cst_72 {dimension_numbers = #tpu.dot_dimension_numbers<[1], [0], [0], [1], [0, 0, 1, 1], [], []>} : vector<2x32xbf16>, vector<32x128xbf16>, vector<2x128xf32> -> vector<2x128xf32>
    %305 = arith.addf %302, %304 : vector<2x128xf32>
    %306 = vector.extract_strided_slice %305 {offsets = [0, 0], sizes = [2, 32], strides = [1, 1]} : vector<2x128xf32> to vector<2x32xf32>
    %307 = arith.negf %306 : vector<2x32xf32>
    %308 = math.exp %307 : vector<2x32xf32>
    %cst_73 = arith.constant 1.000000e+00 : f32
    %309 = vector.broadcast %cst_73 : f32 to vector<2x32xf32>
    %310 = arith.addf %309, %308 : vector<2x32xf32>
    %311 = arith.divf %309, %310 : vector<2x32xf32>
    %312 = vector.extract_strided_slice %305 {offsets = [0, 32], sizes = [2, 32], strides = [1, 1]} : vector<2x128xf32> to vector<2x32xf32>
    %313 = arith.negf %312 : vector<2x32xf32>
    %314 = math.exp %313 : vector<2x32xf32>
    %cst_74 = arith.constant 1.000000e+00 : f32
    %315 = vector.broadcast %cst_74 : f32 to vector<2x32xf32>
    %316 = arith.addf %315, %314 : vector<2x32xf32>
    %317 = arith.divf %315, %316 : vector<2x32xf32>
    %318 = vector.extract_strided_slice %305 {offsets = [0, 64], sizes = [2, 32], strides = [1, 1]} : vector<2x128xf32> to vector<2x32xf32>
    %319 = math.tanh %318 : vector<2x32xf32>
    %320 = vector.extract_strided_slice %305 {offsets = [0, 96], sizes = [2, 32], strides = [1, 1]} : vector<2x128xf32> to vector<2x32xf32>
    %321 = arith.negf %320 : vector<2x32xf32>
    %322 = math.exp %321 : vector<2x32xf32>
    %cst_75 = arith.constant 1.000000e+00 : f32
    %323 = vector.broadcast %cst_75 : f32 to vector<2x32xf32>
    %324 = arith.addf %323, %322 : vector<2x32xf32>
    %325 = arith.divf %323, %324 : vector<2x32xf32>
    %326 = arith.mulf %317, %269 : vector<2x32xf32>
    %327 = arith.mulf %311, %319 : vector<2x32xf32>
    %328 = arith.addf %326, %327 : vector<2x32xf32>
    %329 = math.tanh %328 : vector<2x32xf32>
    %330 = arith.mulf %325, %329 : vector<2x32xf32>
    %cst_76 = arith.constant dense<0.000000e+00> : vector<2xf32>
    %331 = vector.multi_reduction <add>, %330, %cst_76 [1] : vector<2x32xf32> to vector<2xf32>
    %332 = vector.shape_cast %331 : vector<2xf32> to vector<2x1xf32>
    %cst_77 = arith.constant 3.200000e+01 : f32
    %333 = vector.broadcast %cst_77 : f32 to vector<2x1xf32>
    %334 = arith.divf %332, %333 : vector<2x1xf32>
    %335 = vector.broadcast %334 : vector<2x1xf32> to vector<2x32xf32>
    %336 = arith.subf %330, %335 : vector<2x32xf32>
    %337 = vector.broadcast %334 : vector<2x1xf32> to vector<2x32xf32>
    %338 = arith.subf %330, %337 : vector<2x32xf32>
    %339 = arith.mulf %336, %338 : vector<2x32xf32>
    %cst_78 = arith.constant dense<0.000000e+00> : vector<2xf32>
    %340 = vector.multi_reduction <add>, %339, %cst_78 [1] : vector<2x32xf32> to vector<2xf32>
    %341 = vector.shape_cast %340 : vector<2xf32> to vector<2x1xf32>
    %cst_79 = arith.constant 3.200000e+01 : f32
    %342 = vector.broadcast %cst_79 : f32 to vector<2x1xf32>
    %343 = arith.divf %341, %342 : vector<2x1xf32>
    %344 = vector.broadcast %334 : vector<2x1xf32> to vector<2x32xf32>
    %345 = arith.subf %330, %344 : vector<2x32xf32>
    %cst_80 = arith.constant 9.99999974E-6 : f32
    %346 = vector.broadcast %cst_80 : f32 to vector<2x1xf32>
    %347 = arith.addf %343, %346 : vector<2x1xf32>
    %348 = math.rsqrt %347 : vector<2x1xf32>
    %349 = vector.broadcast %348 : vector<2x1xf32> to vector<2x32xf32>
    %350 = arith.mulf %345, %349 : vector<2x32xf32>
    %351 = vector.broadcast %1 : vector<1x32xf32> to vector<2x32xf32>
    %352 = arith.mulf %350, %351 : vector<2x32xf32>
    %353 = vector.broadcast %2 : vector<1x32xf32> to vector<2x32xf32>
    %354 = arith.addf %352, %353 : vector<2x32xf32>
    %355 = arith.index_cast %c5_i32 : i32 to index
    %c0_81 = arith.constant 0 : index
    %c0_82 = arith.constant 0 : index
    %356 = vector.load %arg4[%355, %c0_81, %c0_82] : memref<8x2x32xf32, #tpu.memory_space<vmem>>, vector<1x2x32xf32>
    %357 = vector.shape_cast %356 : vector<1x2x32xf32> to vector<2x32xf32>
    %358 = vector.shape_cast %354 : vector<2x32xf32> to vector<1x2x32xf32>
    tpu.vector_store %arg4[%355, %c0_81, %c0_82], %358 {strides = array<i32>} : memref<8x2x32xf32, #tpu.memory_space<vmem>>, vector<1x2x32xf32>,
    %c6_i32 = arith.constant 6 : i32
    %359 = arith.index_cast %c6_i32 : i32 to index
    %c0_83 = arith.constant 0 : index
    %c0_84 = arith.constant 0 : index
    %360 = vector.load %arg1[%359, %c0_83, %c0_84] : memref<8x2x128xf32, #tpu.memory_space<vmem>>, vector<1x2x128xf32>
    %361 = vector.shape_cast %360 : vector<1x2x128xf32> to vector<2x128xf32>
    %362 = arith.truncf %330 : vector<2x32xf32> to vector<2x32xbf16>
    %cst_85 = arith.constant dense<0.000000e+00> : vector<2x128xf32>
    %363 = tpu.matmul %362, %0, %cst_85 {dimension_numbers = #tpu.dot_dimension_numbers<[1], [0], [0], [1], [0, 0, 1, 1], [], []>} : vector<2x32xbf16>, vector<32x128xbf16>, vector<2x128xf32> -> vector<2x128xf32>
    %364 = arith.addf %361, %363 : vector<2x128xf32>
    %365 = vector.extract_strided_slice %364 {offsets = [0, 0], sizes = [2, 32], strides = [1, 1]} : vector<2x128xf32> to vector<2x32xf32>
    %366 = arith.negf %365 : vector<2x32xf32>
    %367 = math.exp %366 : vector<2x32xf32>
    %cst_86 = arith.constant 1.000000e+00 : f32
    %368 = vector.broadcast %cst_86 : f32 to vector<2x32xf32>
    %369 = arith.addf %368, %367 : vector<2x32xf32>
    %370 = arith.divf %368, %369 : vector<2x32xf32>
    %371 = vector.extract_strided_slice %364 {offsets = [0, 32], sizes = [2, 32], strides = [1, 1]} : vector<2x128xf32> to vector<2x32xf32>
    %372 = arith.negf %371 : vector<2x32xf32>
    %373 = math.exp %372 : vector<2x32xf32>
    %cst_87 = arith.constant 1.000000e+00 : f32
    %374 = vector.broadcast %cst_87 : f32 to vector<2x32xf32>
    %375 = arith.addf %374, %373 : vector<2x32xf32>
    %376 = arith.divf %374, %375 : vector<2x32xf32>
    %377 = vector.extract_strided_slice %364 {offsets = [0, 64], sizes = [2, 32], strides = [1, 1]} : vector<2x128xf32> to vector<2x32xf32>
    %378 = math.tanh %377 : vector<2x32xf32>
    %379 = vector.extract_strided_slice %364 {offsets = [0, 96], sizes = [2, 32], strides = [1, 1]} : vector<2x128xf32> to vector<2x32xf32>
    %380 = arith.negf %379 : vector<2x32xf32>
    %381 = math.exp %380 : vector<2x32xf32>
    %cst_88 = arith.constant 1.000000e+00 : f32
    %382 = vector.broadcast %cst_88 : f32 to vector<2x32xf32>
    %383 = arith.addf %382, %381 : vector<2x32xf32>
    %384 = arith.divf %382, %383 : vector<2x32xf32>
    %385 = arith.mulf %376, %328 : vector<2x32xf32>
    %386 = arith.mulf %370, %378 : vector<2x32xf32>
    %387 = arith.addf %385, %386 : vector<2x32xf32>
    %388 = math.tanh %387 : vector<2x32xf32>
    %389 = arith.mulf %384, %388 : vector<2x32xf32>
    %cst_89 = arith.constant dense<0.000000e+00> : vector<2xf32>
    %390 = vector.multi_reduction <add>, %389, %cst_89 [1] : vector<2x32xf32> to vector<2xf32>
    %391 = vector.shape_cast %390 : vector<2xf32> to vector<2x1xf32>
    %cst_90 = arith.constant 3.200000e+01 : f32
    %392 = vector.broadcast %cst_90 : f32 to vector<2x1xf32>
    %393 = arith.divf %391, %392 : vector<2x1xf32>
    %394 = vector.broadcast %393 : vector<2x1xf32> to vector<2x32xf32>
    %395 = arith.subf %389, %394 : vector<2x32xf32>
    %396 = vector.broadcast %393 : vector<2x1xf32> to vector<2x32xf32>
    %397 = arith.subf %389, %396 : vector<2x32xf32>
    %398 = arith.mulf %395, %397 : vector<2x32xf32>
    %cst_91 = arith.constant dense<0.000000e+00> : vector<2xf32>
    %399 = vector.multi_reduction <add>, %398, %cst_91 [1] : vector<2x32xf32> to vector<2xf32>
    %400 = vector.shape_cast %399 : vector<2xf32> to vector<2x1xf32>
    %cst_92 = arith.constant 3.200000e+01 : f32
    %401 = vector.broadcast %cst_92 : f32 to vector<2x1xf32>
    %402 = arith.divf %400, %401 : vector<2x1xf32>
    %403 = vector.broadcast %393 : vector<2x1xf32> to vector<2x32xf32>
    %404 = arith.subf %389, %403 : vector<2x32xf32>
    %cst_93 = arith.constant 9.99999974E-6 : f32
    %405 = vector.broadcast %cst_93 : f32 to vector<2x1xf32>
    %406 = arith.addf %402, %405 : vector<2x1xf32>
    %407 = math.rsqrt %406 : vector<2x1xf32>
    %408 = vector.broadcast %407 : vector<2x1xf32> to vector<2x32xf32>
    %409 = arith.mulf %404, %408 : vector<2x32xf32>
    %410 = vector.broadcast %1 : vector<1x32xf32> to vector<2x32xf32>
    %411 = arith.mulf %409, %410 : vector<2x32xf32>
    %412 = vector.broadcast %2 : vector<1x32xf32> to vector<2x32xf32>
    %413 = arith.addf %411, %412 : vector<2x32xf32>
    %414 = arith.index_cast %c6_i32 : i32 to index
    %c0_94 = arith.constant 0 : index
    %c0_95 = arith.constant 0 : index
    %415 = vector.load %arg4[%414, %c0_94, %c0_95] : memref<8x2x32xf32, #tpu.memory_space<vmem>>, vector<1x2x32xf32>
    %416 = vector.shape_cast %415 : vector<1x2x32xf32> to vector<2x32xf32>
    %417 = vector.shape_cast %413 : vector<2x32xf32> to vector<1x2x32xf32>
    tpu.vector_store %arg4[%414, %c0_94, %c0_95], %417 {strides = array<i32>} : memref<8x2x32xf32, #tpu.memory_space<vmem>>, vector<1x2x32xf32>,
    %c7_i32 = arith.constant 7 : i32
    %418 = arith.index_cast %c7_i32 : i32 to index
    %c0_96 = arith.constant 0 : index
    %c0_97 = arith.constant 0 : index
    %419 = vector.load %arg1[%418, %c0_96, %c0_97] : memref<8x2x128xf32, #tpu.memory_space<vmem>>, vector<1x2x128xf32>
    %420 = vector.shape_cast %419 : vector<1x2x128xf32> to vector<2x128xf32>
    %421 = arith.truncf %389 : vector<2x32xf32> to vector<2x32xbf16>
    %cst_98 = arith.constant dense<0.000000e+00> : vector<2x128xf32>
    %422 = tpu.matmul %421, %0, %cst_98 {dimension_numbers = #tpu.dot_dimension_numbers<[1], [0], [0], [1], [0, 0, 1, 1], [], []>} : vector<2x32xbf16>, vector<32x128xbf16>, vector<2x128xf32> -> vector<2x128xf32>
    %423 = arith.addf %420, %422 : vector<2x128xf32>
    %424 = vector.extract_strided_slice %423 {offsets = [0, 0], sizes = [2, 32], strides = [1, 1]} : vector<2x128xf32> to vector<2x32xf32>
    %425 = arith.negf %424 : vector<2x32xf32>
    %426 = math.exp %425 : vector<2x32xf32>
    %cst_99 = arith.constant 1.000000e+00 : f32
    %427 = vector.broadcast %cst_99 : f32 to vector<2x32xf32>
    %428 = arith.addf %427, %426 : vector<2x32xf32>
    %429 = arith.divf %427, %428 : vector<2x32xf32>
    %430 = vector.extract_strided_slice %423 {offsets = [0, 32], sizes = [2, 32], strides = [1, 1]} : vector<2x128xf32> to vector<2x32xf32>
    %431 = arith.negf %430 : vector<2x32xf32>
    %432 = math.exp %431 : vector<2x32xf32>
    %cst_100 = arith.constant 1.000000e+00 : f32
    %433 = vector.broadcast %cst_100 : f32 to vector<2x32xf32>
    %434 = arith.addf %433, %432 : vector<2x32xf32>
    %435 = arith.divf %433, %434 : vector<2x32xf32>
    %436 = vector.extract_strided_slice %423 {offsets = [0, 64], sizes = [2, 32], strides = [1, 1]} : vector<2x128xf32> to vector<2x32xf32>
    %437 = math.tanh %436 : vector<2x32xf32>
    %438 = vector.extract_strided_slice %423 {offsets = [0, 96], sizes = [2, 32], strides = [1, 1]} : vector<2x128xf32> to vector<2x32xf32>
    %439 = arith.negf %438 : vector<2x32xf32>
    %440 = math.exp %439 : vector<2x32xf32>
    %cst_101 = arith.constant 1.000000e+00 : f32
    %441 = vector.broadcast %cst_101 : f32 to vector<2x32xf32>
    %442 = arith.addf %441, %440 : vector<2x32xf32>
    %443 = arith.divf %441, %442 : vector<2x32xf32>
    %444 = arith.mulf %435, %387 : vector<2x32xf32>
    %445 = arith.mulf %429, %437 : vector<2x32xf32>
    %446 = arith.addf %444, %445 : vector<2x32xf32>
    %447 = math.tanh %446 : vector<2x32xf32>
    %448 = arith.mulf %443, %447 : vector<2x32xf32>
    %cst_102 = arith.constant dense<0.000000e+00> : vector<2xf32>
    %449 = vector.multi_reduction <add>, %448, %cst_102 [1] : vector<2x32xf32> to vector<2xf32>
    %450 = vector.shape_cast %449 : vector<2xf32> to vector<2x1xf32>
    %cst_103 = arith.constant 3.200000e+01 : f32
    %451 = vector.broadcast %cst_103 : f32 to vector<2x1xf32>
    %452 = arith.divf %450, %451 : vector<2x1xf32>
    %453 = vector.broadcast %452 : vector<2x1xf32> to vector<2x32xf32>
    %454 = arith.subf %448, %453 : vector<2x32xf32>
    %455 = vector.broadcast %452 : vector<2x1xf32> to vector<2x32xf32>
    %456 = arith.subf %448, %455 : vector<2x32xf32>
    %457 = arith.mulf %454, %456 : vector<2x32xf32>
    %cst_104 = arith.constant dense<0.000000e+00> : vector<2xf32>
    %458 = vector.multi_reduction <add>, %457, %cst_104 [1] : vector<2x32xf32> to vector<2xf32>
    %459 = vector.shape_cast %458 : vector<2xf32> to vector<2x1xf32>
    %cst_105 = arith.constant 3.200000e+01 : f32
    %460 = vector.broadcast %cst_105 : f32 to vector<2x1xf32>
    %461 = arith.divf %459, %460 : vector<2x1xf32>
    %462 = vector.broadcast %452 : vector<2x1xf32> to vector<2x32xf32>
    %463 = arith.subf %448, %462 : vector<2x32xf32>
    %cst_106 = arith.constant 9.99999974E-6 : f32
    %464 = vector.broadcast %cst_106 : f32 to vector<2x1xf32>
    %465 = arith.addf %461, %464 : vector<2x1xf32>
    %466 = math.rsqrt %465 : vector<2x1xf32>
    %467 = vector.broadcast %466 : vector<2x1xf32> to vector<2x32xf32>
    %468 = arith.mulf %463, %467 : vector<2x32xf32>
    %469 = vector.broadcast %1 : vector<1x32xf32> to vector<2x32xf32>
    %470 = arith.mulf %468, %469 : vector<2x32xf32>
    %471 = vector.broadcast %2 : vector<1x32xf32> to vector<2x32xf32>
    %472 = arith.addf %470, %471 : vector<2x32xf32>
    %473 = arith.index_cast %c7_i32 : i32 to index
    %c0_107 = arith.constant 0 : index
    %c0_108 = arith.constant 0 : index
    %474 = vector.load %arg4[%473, %c0_107, %c0_108] : memref<8x2x32xf32, #tpu.memory_space<vmem>>, vector<1x2x32xf32>
    %475 = vector.shape_cast %474 : vector<1x2x32xf32> to vector<2x32xf32>
    %476 = vector.shape_cast %472 : vector<2x32xf32> to vector<1x2x32xf32>
    tpu.vector_store %arg4[%473, %c0_107, %c0_108], %476 {strides = array<i32>} : memref<8x2x32xf32, #tpu.memory_space<vmem>>, vector<1x2x32xf32>,
    %c8_i32 = arith.constant 8 : i32
    return
  }
  func.func @transform_0(%arg0: i32) -> (i32, i32, i32) {
    %c0_i32 = arith.constant 0 : i32
    %c0_i32_0 = arith.constant 0 : i32
    %c0_i32_1 = arith.constant 0 : i32
    %c0_i32_2 = arith.constant 0 : i32
    return %c0_i32, %c0_i32_0, %c0_i32_1 : i32, i32, i32
  }
  func.func @transform_1(%arg0: i32) -> (i32, i32) {
    %c0_i32 = arith.constant 0 : i32
    %c0_i32_0 = arith.constant 0 : i32
    %c0_i32_1 = arith.constant 0 : i32
    return %c0_i32, %c0_i32_0 : i32, i32
  }
  func.func @transform_2(%arg0: i32) -> (i32, i32) {
    %c0_i32 = arith.constant 0 : i32
    %c0_i32_0 = arith.constant 0 : i32
    %c0_i32_1 = arith.constant 0 : i32
    return %c0_i32, %c0_i32_0 : i32, i32
  }
  func.func @transform_3(%arg0: i32) -> (i32, i32, i32) {
    %c0_i32 = arith.constant 0 : i32
    %c0_i32_0 = arith.constant 0 : i32
    %c0_i32_1 = arith.constant 0 : i32
    %c0_i32_2 = arith.constant 0 : i32
    return %c0_i32, %c0_i32_0, %c0_i32_1 : i32, i32, i32
  }
}

</mosaic_0001>

<bundles_post_ra>
// kernel: tpu_custom_call.1
= control target key start
LH: loop header
LB: loop body
LE: loop exit
PB: predicated region body
PF: predicated region fallthrough
CT: control target
= control target key end

     0   :  { %8 = vsyncpa [#allocation3], 0  ;;  %s1353_s0 = inlined_call_operand.hbm [shape: f32[8,2,128], index: 0, kind: input, shape index: {}]   ;;  %s1354_s1 = inlined_call_operand.hbm [shape: bf16[32,128], index: 1, kind: input, shape index: {}]   ;;  %s1355_s2 = inlined_call_operand.hbm [shape: f32[2,32], index: 2, kind: input, shape index: {}]   ;;  %s1356_s3 = inlined_call_operand.hbm [shape: f32[8,2,32], index: 3, kind: output, shape index: {}]  }
   0x1   :  { %9 = vsyncpa [#allocation6], 0  ;;  %s28_s14 = sshll.u32 %s1354_s1, 4  ;;  %s29_s14 = int_to_ptr.hbm [resolvable:$true] %s28_s14 }
   0x2   :  { %10 = vsyncpa [#allocation4], 0  ;;  %s1118_s15 = smov [#allocation5]   ;;  %s15_s19 = sshll.u32 %s1353_s0, 4  ;;  %s16_s19 = int_to_ptr.hbm [resolvable:$true] %s15_s19 }
   0x3   :  { %s30_s16 = sshll.u32 %s1118_s15, 4  ;;  %s1119_s20 = smov 64   ;;  %s31_s16 = int_to_ptr.vmem [resolvable:$true] %s30_s16 }
   0x4   :  { %s1120_s21 = smov 4   ;;  %s1121_s22 = smov [#allocation2]  }
   0x5   :  { %36 = dma.hbm_to_vmem [thread:$0]  %s29_s14, 256, %s31_s16, [#allocation6], %s1119_s20, %s1119_s20, %s1120_s21  }
   0x6   :  { %s17_s23 = sshll.u32 %s1121_s22, 4  ;;  %s1122_s24 = smov 32   ;;  %s18_s23 = int_to_ptr.vmem [resolvable:$true] %s17_s23 }
   0x7   :  { %s1123_s1 = smov 2   ;;  %s42_s27 = sshll.u32 %s1355_s2, 4  ;;  %s43_s27 = int_to_ptr.hbm [resolvable:$true] %s42_s27 }
   0x8   :  { %23 = dma.hbm_to_vmem [thread:$0]  %s16_s19, 256, %s18_s23, [#allocation3], %s1122_s24, %s1122_s24, %s1123_s1  }
   0x9   :  { %s1124_s0 = smov [#allocation7]  }
   0xa   :  { %s44_s28 = sshll.u32 %s1124_s0, 4  ;;  %s45_s28 = int_to_ptr.vmem [resolvable:$true] %s44_s28 }
   0xb   :  { %47 = dma.hbm_to_vmem [thread:$0]  %s43_s27, 32, %s45_s28, [#allocation6]  }
   0xc   :  { %1112 = dma.done.wait [#allocation3], 256  }
   0xd   :  { %1113 = vsyncadd [#allocation3], 4294967040 }
   0xe   :  { %1114 = dma.done.wait [#allocation6], 288  }
   0xf   :  { %1115 = vsyncadd [#allocation6], 4294967008  ;;  %v920_v0 = vld [vmem:[#allocation5 + $0x8] sm:$0xff]  ;;  %v919_v1 = vld [vmem:[#allocation5] sm:$0xff]  ;;  %v1125_v2 = vmov 0   ;;  %vm80_vm4 = vcmask 261120  }
  0x10   :  { %90 = vmatpush.bf16.msra.mxu0 %v920_v0  ;;  %205 = vmatpush.bf16.msra.mxu1 %v920_v0  ;;  %v67_v3 = vld [vmem:[#allocation2] sm:$0x3]  ;;  %v191_v31 = vld [vmem:[#allocation2 + $0x2] sm:$0x3]  ;;  %v289_v59 = vld [vmem:[#allocation2 + $0x4] sm:$0x3] }
  0x11   :  { %303 = vmatpush.bf16.msra.mxu2 %v920_v0  ;;  %401 = vmatpush.bf16.msra.mxu3 %v920_v0  ;;  %s1127_s2 = smov 96   ;;  %s1128_s29 = smov [#allocation8]  }
  0x12   :  { %s880_s30 = sshll.u32 %s1128_s29, 4  ;;  %s882_s6 = sshll.u32 %s1356_s3, 4  ;;  %s881_s30 = int_to_ptr.vmem [resolvable:$true] %s880_s30  ;;  %s883_s6 = int_to_ptr.hbm [resolvable:$true] %s882_s6 }
  0x14   :  { %91 = vmatpush.bf16.msra.mxu0 %v919_v1  ;;  %206 = vmatpush.bf16.msra.mxu1 %v919_v1 }
  0x15   :  { %304 = vmatpush.bf16.msra.mxu2 %v919_v1  ;;  %402 = vmatpush.bf16.msra.mxu3 %v919_v1 }
  0x17   :  { %92 = vmatmul.bf16.vlgmr.msra.gmra.mxu0 %v1125_v2 }
  0x18   :  { %499 = vmatpush.bf16.msrb.mxu0 %v920_v0  ;;  %597 = vmatpush.bf16.msrb.mxu1 %v920_v0 }
  0x19   :  { %695 = vmatpush.bf16.msrb.mxu2 %v920_v0  ;;  %793 = vmatpush.bf16.msrb.mxu3 %v920_v0 }
  0x1c   :  { %500 = vmatpush.bf16.msrb.mxu0 %v919_v1  ;;  %598 = vmatpush.bf16.msrb.mxu1 %v919_v1 }
  0x1d   :  { %696 = vmatpush.bf16.msrb.mxu2 %v919_v1  ;;  %794 = vmatpush.bf16.msrb.mxu3 %v919_v1 }
  0x94   :  { %v93_v4 = vpop.f32.mrf.mxu0 }
  0x95   :  { %v97_v5 = vadd.f32 %v93_v4, %v67_v3 }
  0x97   :  { %934 = vtanh.f32 %v97_v5  ;;  %v904_v8 = vmul.f32 -1.442695, %v97_v5 }
  0x99   :  { %936 = vpow2.f32 %v904_v8 }
  0x9c   :  { %v95_v6 = vpop.f32.mrf.mxu0 }
  0x9d   :  { %v935_v7 = vpop.eup %934 }
  0x9e   :  { %120 = vrot.lane.b32.xlu0 %v935_v7, %s1119_s20 }
  0x9f   :  { %v937_v9 = vpop.eup %936 }
  0xa0   :  { %v101_v10 = vadd.f32 1.0, %v937_v9 }
  0xa2   :  { %938 = vrcp.f32 %v101_v10  ;;  %v113_v16 = vand.u32 2147483648, %v101_v10  ;;  %vm107_vm1 = vweird.f32 %v101_v10  ;;  %v111_v17 = vand.u32 2147483647, %v101_v10 }
  0xa4   :  { %v114_v19 = vor.u32 1.1754944e-38, %v113_v16  ;;  %vm112_vm3 = vcmp.eq.f32.partialorder %v111_v17, 8.507059e+37 }
  0xa8   :  { %v939_v11 = vpop.eup %938 }
  0xa9   :  { %v103_v12 = vmul.f32 %v939_v11, %v101_v10  ;;  %vm108_vm0 = vweird.f32 %v939_v11 }
  0xaa   :  { %vm109_vm2 = vmor %vm107_vm1, %vm108_vm0 }
  0xab   :  { %v104_v13 = vsub.f32 1.0, %v103_v12 }
  0xad   :  { %v105_v14 = vmul.f32 %v939_v11, %v104_v13 }
  0xaf   :  { %v106_v15 = vadd.f32 %v939_v11, %v105_v14 }
  0xb1   :  { %v110_v18 = vsel %vm109_vm2, %v939_v11, %v106_v15 }
  0xb2   :  { %v115_v21 = vsel %vm112_vm3, %v114_v19, %v110_v18 }
  0xb3   :  { %v118_v23 = vmul.f32 0.0, %v115_v21 }
 0x110   :  { %v121_v20 = vpop.permute.xlu0 %120 }
 0x111   :  { %v123_v22 = vmul.f32 %v121_v20, %v115_v21 }
 0x113   :  { %125 = vrot.lane.b32.xlu0 %v123_v22, %s1122_s24 }
 0x185   :  { %v126_v24 = vpop.permute.xlu0 %125 }
 0x186   :  { %v128_v25 = vadd.f32 %v126_v24, %v118_v23  ;;  %v387_v23 = vld [vmem:[#allocation2 + $0x6] sm:$0x3] }
 0x188   :  { %940 = vtanh.f32 %v128_v25 }
 0x18e   :  { %v941_v26 = vpop.eup %940 }
 0x18f   :  { %131 = vrot.lane.b32.xlu1 %v941_v26, %s1119_s20 }
 0x201   :  { %v132_v27 = vpop.permute.xlu1 %131 }
 0x202   :  { %v1166_v28 = vmul.f32 %v132_v27, %v115_v21 }
 0x204   :  { %v192_v29 = vpack.c.bf16 %v1166_v28, %v1166_v28 }
 0x206   :  { %194 = vrot.lane.b32.xlu1 %v192_v29, %s1122_s24 }
 0x278   :  { %v195_v30 = vpop.permute.xlu1 %194 }
 0x279   :  { %905 = vmatmul.msk.bf16.vlgmr.msra.gmra.mxu1 %vm80_vm4, %v195_v30 }
 0x2f6   :  { %v208_v32 = vpop.f32.mrf.mxu1 }
 0x2f7   :  { %v212_v33 = vadd.f32 %v208_v32, %v191_v31 }
 0x2f9   :  { %942 = vtanh.f32 %v212_v33  ;;  %v906_v36 = vmul.f32 -1.442695, %v212_v33 }
 0x2fb   :  { %944 = vpow2.f32 %v906_v36 }
 0x2fe   :  { %v210_v34 = vpop.f32.mrf.mxu1 }
 0x2ff   :  { %v943_v35 = vpop.eup %942 }
 0x300   :  { %235 = vrot.lane.b32.xlu2 %v943_v35, %s1119_s20 }
 0x301   :  { %v945_v37 = vpop.eup %944 }
 0x302   :  { %v216_v38 = vadd.f32 1.0, %v945_v37 }
 0x304   :  { %946 = vrcp.f32 %v216_v38  ;;  %v228_v44 = vand.u32 2147483648, %v216_v38  ;;  %vm222_vm6 = vweird.f32 %v216_v38  ;;  %v226_v45 = vand.u32 2147483647, %v216_v38 }
 0x306   :  { %v229_v47 = vor.u32 1.1754944e-38, %v228_v44  ;;  %vm227_vm8 = vcmp.eq.f32.partialorder %v226_v45, 8.507059e+37 }
 0x30a   :  { %v947_v39 = vpop.eup %946 }
 0x30b   :  { %v218_v40 = vmul.f32 %v947_v39, %v216_v38  ;;  %vm223_vm5 = vweird.f32 %v947_v39 }
 0x30c   :  { %vm224_vm7 = vmor %vm222_vm6, %vm223_vm5 }
 0x30d   :  { %v219_v41 = vsub.f32 1.0, %v218_v40 }
 0x30f   :  { %v220_v42 = vmul.f32 %v947_v39, %v219_v41 }
 0x311   :  { %v221_v43 = vadd.f32 %v947_v39, %v220_v42 }
 0x313   :  { %v225_v46 = vsel %vm224_vm7, %v947_v39, %v221_v43 }
 0x314   :  { %v230_v49 = vsel %vm227_vm8, %v229_v47, %v225_v46 }
 0x315   :  { %v233_v51 = vmul.f32 %v230_v49, %v128_v25 }
 0x35a   :  { %v236_v48 = vpop.permute.xlu2 %235 }
 0x35b   :  { %v238_v50 = vmul.f32 %v236_v48, %v230_v49 }
 0x35d   :  { %240 = vrot.lane.b32.xlu2 %v238_v50, %s1122_s24 }
 0x3b7   :  { %v241_v52 = vpop.permute.xlu2 %240 }
 0x3b8   :  { %v243_v53 = vadd.f32 %v241_v52, %v233_v51  ;;  %v485_v52 = vld [vmem:[#allocation2 + $0x8] sm:$0x3] }
 0x3ba   :  { %948 = vtanh.f32 %v243_v53 }
 0x3c0   :  { %v949_v54 = vpop.eup %948 }
 0x3c1   :  { %246 = vrot.lane.b32.xlu0 %v949_v54, %s1119_s20 }
 0x433   :  { %v247_v55 = vpop.permute.xlu0 %246 }
 0x434   :  { %v1175_v56 = vmul.f32 %v247_v55, %v230_v49 }
 0x436   :  { %v290_v57 = vpack.c.bf16 %v1175_v56, %v1175_v56 }
 0x438   :  { %292 = vrot.lane.b32.xlu1 %v290_v57, %s1122_s24 }
 0x4aa   :  { %v293_v58 = vpop.permute.xlu1 %292 }
 0x4ab   :  { %907 = vmatmul.msk.bf16.vlgmr.msra.gmra.mxu2 %vm80_vm4, %v293_v58 }
 0x52e   :  { %v306_v60 = vpop.f32.mrf.mxu2 }
 0x52f   :  { %v310_v61 = vadd.f32 %v306_v60, %v289_v59 }
 0x531   :  { %950 = vtanh.f32 %v310_v61  ;;  %v908_v0 = vmul.f32 -1.442695, %v310_v61 }
 0x533   :  { %952 = vpow2.f32 %v908_v0 }
 0x536   :  { %v308_v62 = vpop.f32.mrf.mxu2 }
 0x537   :  { %v951_v63 = vpop.eup %950 }
 0x538   :  { %333 = vrot.lane.b32.xlu2 %v951_v63, %s1119_s20 }
 0x539   :  { %v953_v1 = vpop.eup %952 }
 0x53a   :  { %v314_v2 = vadd.f32 1.0, %v953_v1 }
 0x53c   :  { %954 = vrcp.f32 %v314_v2  ;;  %v326_v8 = vand.u32 2147483648, %v314_v2  ;;  %vm320_vm10 = vweird.f32 %v314_v2  ;;  %v324_v9 = vand.u32 2147483647, %v314_v2 }
 0x53e   :  { %v327_v11 = vor.u32 1.1754944e-38, %v326_v8  ;;  %vm325_vm12 = vcmp.eq.f32.partialorder %v324_v9, 8.507059e+37 }
 0x542   :  { %v955_v3 = vpop.eup %954 }
 0x543   :  { %v316_v4 = vmul.f32 %v955_v3, %v314_v2  ;;  %vm321_vm9 = vweird.f32 %v955_v3 }
 0x544   :  { %vm322_vm11 = vmor %vm320_vm10, %vm321_vm9 }
 0x545   :  { %v317_v5 = vsub.f32 1.0, %v316_v4 }
 0x547   :  { %v318_v6 = vmul.f32 %v955_v3, %v317_v5 }
 0x549   :  { %v319_v7 = vadd.f32 %v955_v3, %v318_v6 }
 0x54b   :  { %v323_v10 = vsel %vm322_vm11, %v955_v3, %v319_v7 }
 0x54c   :  { %v328_v13 = vsel %vm325_vm12, %v327_v11, %v323_v10 }
 0x54d   :  { %v331_v15 = vmul.f32 %v328_v13, %v243_v53 }
 0x592   :  { %v334_v12 = vpop.permute.xlu2 %333 }
 0x593   :  { %v336_v14 = vmul.f32 %v334_v12, %v328_v13 }
 0x595   :  { %338 = vrot.lane.b32.xlu0 %v336_v14, %s1122_s24 }
 0x607   :  { %v339_v16 = vpop.permute.xlu0 %338 }
 0x608   :  { %v341_v17 = vadd.f32 %v339_v16, %v331_v15 }
 0x60a   :  { %956 = vtanh.f32 %v341_v17 }
 0x610   :  { %v957_v18 = vpop.eup %956 }
 0x611   :  { %344 = vrot.lane.b32.xlu1 %v957_v18, %s1119_s20 }
 0x683   :  { %v345_v19 = vpop.permute.xlu1 %344 }
 0x684   :  { %v1184_v20 = vmul.f32 %v345_v19, %v328_v13 }
 0x686   :  { %v388_v21 = vpack.c.bf16 %v1184_v20, %v1184_v20 }
 0x688   :  { %390 = vrot.lane.b32.xlu2 %v388_v21, %s1122_s24 }
 0x6e2   :  { %v391_v22 = vpop.permute.xlu2 %390 }
 0x6e3   :  { %909 = vmatmul.msk.bf16.vlgmr.msra.gmra.mxu3 %vm80_vm4, %v391_v22 }
 0x766   :  { %v404_v24 = vpop.f32.mrf.mxu3 }
 0x767   :  { %v408_v25 = vadd.f32 %v404_v24, %v387_v23 }
 0x769   :  { %958 = vtanh.f32 %v408_v25  ;;  %v910_v29 = vmul.f32 -1.442695, %v408_v25 }
 0x76b   :  { %960 = vpow2.f32 %v910_v29 }
 0x76e   :  { %v406_v26 = vpop.f32.mrf.mxu3 }
 0x76f   :  { %v959_v27 = vpop.eup %958 }
 0x770   :  { %431 = vrot.lane.b32.xlu0 %v959_v27, %s1119_s20 }
 0x771   :  { %v961_v30 = vpop.eup %960 }
 0x772   :  { %v412_v31 = vadd.f32 1.0, %v961_v30 }
 0x774   :  { %962 = vrcp.f32 %v412_v31  ;;  %v424_v37 = vand.u32 2147483648, %v412_v31  ;;  %vm418_vm14 = vweird.f32 %v412_v31  ;;  %v422_v38 = vand.u32 2147483647, %v412_v31 }
 0x776   :  { %v425_v40 = vor.u32 1.1754944e-38, %v424_v37  ;;  %vm423_vm0 = vcmp.eq.f32.partialorder %v422_v38, 8.507059e+37 }
 0x77a   :  { %v963_v32 = vpop.eup %962 }
 0x77b   :  { %v414_v33 = vmul.f32 %v963_v32, %v412_v31  ;;  %vm419_vm13 = vweird.f32 %v963_v32 }
 0x77c   :  { %vm420_vm15 = vmor %vm418_vm14, %vm419_vm13  ;;  %vm139_vm14 = vcmask 254976  }
 0x77d   :  { %v415_v34 = vsub.f32 1.0, %v414_v33 }
 0x77f   :  { %v416_v35 = vmul.f32 %v963_v32, %v415_v34 }
 0x781   :  { %v417_v36 = vadd.f32 %v963_v32, %v416_v35 }
 0x783   :  { %v421_v39 = vsel %vm420_vm15, %v963_v32, %v417_v36 }
 0x784   :  { %v426_v42 = vsel %vm423_vm0, %v425_v40, %v421_v39 }
 0x785   :  { %v429_v44 = vmul.f32 %v426_v42, %v341_v17  ;;  %v583_v17 = vld [vmem:[#allocation2 + $0xa] sm:$0x3] }
 0x7e2   :  { %v432_v41 = vpop.permute.xlu0 %431 }
 0x7e3   :  { %v434_v43 = vmul.f32 %v432_v41, %v426_v42 }
 0x7e5   :  { %436 = vrot.lane.b32.xlu1 %v434_v43, %s1122_s24 }
 0x857   :  { %v437_v45 = vpop.permute.xlu1 %436 }
 0x858   :  { %v439_v46 = vadd.f32 %v437_v45, %v429_v44 }
 0x85a   :  { %964 = vtanh.f32 %v439_v46 }
 0x860   :  { %v965_v47 = vpop.eup %964 }
 0x861   :  { %442 = vrot.lane.b32.xlu2 %v965_v47, %s1119_s20  ;;  %v681_v47 = vld [vmem:[#allocation2 + $0xc] sm:$0x3] }
 0x8bb   :  { %v443_v48 = vpop.permute.xlu2 %442 }
 0x8bc   :  { %v1193_v49 = vmul.f32 %v443_v48, %v426_v42 }
 0x8be   :  { %v486_v50 = vpack.c.bf16 %v1193_v49, %v1193_v49 }
 0x8c0   :  { %488 = vrot.lane.b32.xlu0 %v486_v50, %s1122_s24 }
 0x932   :  { %v489_v51 = vpop.permute.xlu0 %488 }
 0x933   :  { %911 = vmatmul.msk.bf16.vlgmr.msrb.gmra.mxu0 %vm80_vm4, %v489_v51 }
 0x9b0   :  { %v502_v53 = vpop.f32.mrf.mxu0 }
 0x9b1   :  { %v506_v54 = vadd.f32 %v502_v53, %v485_v52 }
 0x9b3   :  { %966 = vtanh.f32 %v506_v54  ;;  %v912_v58 = vmul.f32 -1.442695, %v506_v54 }
 0x9b5   :  { %968 = vpow2.f32 %v912_v58 }
 0x9b8   :  { %v504_v55 = vpop.f32.mrf.mxu0 }
 0x9b9   :  { %v967_v57 = vpop.eup %966 }
 0x9ba   :  { %529 = vrot.lane.b32.xlu1 %v967_v57, %s1119_s20 }
 0x9bb   :  { %v969_v59 = vpop.eup %968 }
 0x9bc   :  { %v510_v60 = vadd.f32 1.0, %v969_v59 }
 0x9be   :  { %970 = vrcp.f32 %v510_v60  ;;  %v522_v2 = vand.u32 2147483648, %v510_v60  ;;  %vm516_vm2 = vweird.f32 %v510_v60  ;;  %v520_v3 = vand.u32 2147483647, %v510_v60 }
 0x9c0   :  { %v523_v5 = vor.u32 1.1754944e-38, %v522_v2  ;;  %vm521_vm5 = vcmp.eq.f32.partialorder %v520_v3, 8.507059e+37 }
 0x9c4   :  { %v971_v61 = vpop.eup %970 }
 0x9c5   :  { %v512_v62 = vmul.f32 %v971_v61, %v510_v60  ;;  %vm517_vm1 = vweird.f32 %v971_v61 }
 0x9c6   :  { %vm518_vm3 = vmor %vm516_vm2, %vm517_vm1 }
 0x9c7   :  { %v513_v63 = vsub.f32 1.0, %v512_v62 }
 0x9c9   :  { %v514_v0 = vmul.f32 %v971_v61, %v513_v63 }
 0x9cb   :  { %v515_v1 = vadd.f32 %v971_v61, %v514_v0 }
 0x9cd   :  { %v519_v4 = vsel %vm518_vm3, %v971_v61, %v515_v1 }
 0x9ce   :  { %v524_v7 = vsel %vm521_vm5, %v523_v5, %v519_v4 }
 0x9cf   :  { %v527_v9 = vmul.f32 %v524_v7, %v439_v46 }
 0xa2c   :  { %v530_v6 = vpop.permute.xlu1 %529 }
 0xa2d   :  { %v532_v8 = vmul.f32 %v530_v6, %v524_v7 }
 0xa2f   :  { %534 = vrot.lane.b32.xlu2 %v532_v8, %s1122_s24 }
 0xa89   :  { %v535_v10 = vpop.permute.xlu2 %534 }
 0xa8a   :  { %v537_v11 = vadd.f32 %v535_v10, %v527_v9 }
 0xa8c   :  { %972 = vtanh.f32 %v537_v11 }
 0xa92   :  { %v973_v12 = vpop.eup %972 }
 0xa93   :  { %540 = vrot.lane.b32.xlu0 %v973_v12, %s1119_s20 }
 0xb05   :  { %v541_v13 = vpop.permute.xlu0 %540 }
 0xb06   :  { %v1202_v14 = vmul.f32 %v541_v13, %v524_v7 }
 0xb08   :  { %v584_v15 = vpack.c.bf16 %v1202_v14, %v1202_v14 }
 0xb0a   :  { %586 = vrot.lane.b32.xlu1 %v584_v15, %s1122_s24  ;;  %v1126_v15 = vmov 32.0  }
 0xb7c   :  { %v587_v16 = vpop.permute.xlu1 %586 }
 0xb7d   :  { %913 = vmatmul.msk.bf16.vlgmr.msrb.gmra.mxu1 %vm80_vm4, %v587_v16 }
 0xbfa   :  { %v600_v18 = vpop.f32.mrf.mxu1 }
 0xbfb   :  { %v604_v19 = vadd.f32 %v600_v18, %v583_v17 }
 0xbfd   :  { %974 = vtanh.f32 %v604_v19  ;;  %v914_v23 = vmul.f32 -1.442695, %v604_v19 }
 0xbff   :  { %976 = vpow2.f32 %v914_v23 }
 0xc02   :  { %v602_v21 = vpop.f32.mrf.mxu1 }
 0xc03   :  { %v975_v22 = vpop.eup %974 }
 0xc04   :  { %627 = vrot.lane.b32.xlu2 %v975_v22, %s1119_s20 }
 0xc05   :  { %v977_v24 = vpop.eup %976 }
 0xc06   :  { %v608_v25 = vadd.f32 1.0, %v977_v24 }
 0xc08   :  { %978 = vrcp.f32 %v608_v25  ;;  %v620_v32 = vand.u32 2147483648, %v608_v25  ;;  %vm614_vm7 = vweird.f32 %v608_v25  ;;  %v618_v33 = vand.u32 2147483647, %v608_v25 }
 0xc0a   :  { %v621_v35 = vor.u32 1.1754944e-38, %v620_v32  ;;  %vm619_vm9 = vcmp.eq.f32.partialorder %v618_v33, 8.507059e+37 }
 0xc0e   :  { %v979_v26 = vpop.eup %978 }
 0xc0f   :  { %v610_v27 = vmul.f32 %v979_v26, %v608_v25  ;;  %vm615_vm6 = vweird.f32 %v979_v26 }
 0xc10   :  { %vm616_vm8 = vmor %vm614_vm7, %vm615_vm6 }
 0xc11   :  { %v611_v29 = vsub.f32 1.0, %v610_v27 }
 0xc13   :  { %v612_v30 = vmul.f32 %v979_v26, %v611_v29  ;;  %v779_v29 = vld [vmem:[#allocation2 + $0xe] sm:$0x3] }
 0xc15   :  { %v613_v31 = vadd.f32 %v979_v26, %v612_v30 }
 0xc17   :  { %v617_v34 = vsel %vm616_vm8, %v979_v26, %v613_v31 }
 0xc18   :  { %v622_v37 = vsel %vm619_vm9, %v621_v35, %v617_v34  ;;  %v932_v34 = vld [vmem:[#allocation7] ss:$0 sm:$0xff]  ;;  %v933_v35 = vld [vmem:[#allocation7 + $0x1] ss:$0 sm:$0xff] }
 0xc19   :  { %v625_v39 = vmul.f32 %v622_v37, %v537_v11 }
 0xc5e   :  { %v628_v36 = vpop.permute.xlu2 %627 }
 0xc5f   :  { %v630_v38 = vmul.f32 %v628_v36, %v622_v37 }
 0xc61   :  { %632 = vrot.lane.b32.xlu0 %v630_v38, %s1122_s24 }
 0xcd3   :  { %v633_v40 = vpop.permute.xlu0 %632 }
 0xcd4   :  { %v635_v41 = vadd.f32 %v633_v40, %v625_v39 }
 0xcd6   :  { %980 = vtanh.f32 %v635_v41 }
 0xcdc   :  { %v981_v42 = vpop.eup %980 }
 0xcdd   :  { %638 = vrot.lane.b32.xlu1 %v981_v42, %s1119_s20 }
 0xd4f   :  { %v639_v43 = vpop.permute.xlu1 %638 }
 0xd50   :  { %v1211_v44 = vmul.f32 %v639_v43, %v622_v37 }
 0xd52   :  { %v682_v45 = vpack.c.bf16 %v1211_v44, %v1211_v44 }
 0xd54   :  { %684 = vrot.lane.b32.xlu2 %v682_v45, %s1122_s24 }
 0xdae   :  { %v685_v46 = vpop.permute.xlu2 %684 }
 0xdaf   :  { %915 = vmatmul.msk.bf16.vlgmr.msrb.gmra.mxu2 %vm80_vm4, %v685_v46 }
 0xe32   :  { %v698_v48 = vpop.f32.mrf.mxu2 }
 0xe33   :  { %v702_v50 = vadd.f32 %v698_v48, %v681_v47 }
 0xe35   :  { %982 = vtanh.f32 %v702_v50  ;;  %v916_v53 = vmul.f32 -1.442695, %v702_v50 }
 0xe37   :  { %984 = vpow2.f32 %v916_v53 }
 0xe3a   :  { %v700_v51 = vpop.f32.mrf.mxu2 }
 0xe3b   :  { %v983_v52 = vpop.eup %982 }
 0xe3c   :  { %725 = vrot.lane.b32.xlu0 %v983_v52, %s1119_s20 }
 0xe3d   :  { %v985_v54 = vpop.eup %984 }
 0xe3e   :  { %v706_v55 = vadd.f32 1.0, %v985_v54 }
 0xe40   :  { %986 = vrcp.f32 %v706_v55  ;;  %v718_v62 = vand.u32 2147483648, %v706_v55  ;;  %vm712_vm11 = vweird.f32 %v706_v55  ;;  %v716_v63 = vand.u32 2147483647, %v706_v55 }
 0xe42   :  { %v719_v1 = vor.u32 1.1754944e-38, %v718_v62  ;;  %vm717_vm13 = vcmp.eq.f32.partialorder %v716_v63, 8.507059e+37 }
 0xe46   :  { %v987_v57 = vpop.eup %986 }
 0xe47   :  { %v708_v58 = vmul.f32 %v987_v57, %v706_v55  ;;  %vm713_vm10 = vweird.f32 %v987_v57 }
 0xe48   :  { %vm714_vm12 = vmor %vm712_vm11, %vm713_vm10 }
 0xe49   :  { %v709_v59 = vsub.f32 1.0, %v708_v58 }
 0xe4b   :  { %v710_v60 = vmul.f32 %v987_v57, %v709_v59 }
 0xe4d   :  { %v711_v61 = vadd.f32 %v987_v57, %v710_v60 }
 0xe4f   :  { %v715_v0 = vsel %vm714_vm12, %v987_v57, %v711_v61 }
 0xe50   :  { %v720_v3 = vsel %vm717_vm13, %v719_v1, %v715_v0 }
 0xe51   :  { %v723_v5 = vmul.f32 %v720_v3, %v635_v41 }
 0xeae   :  { %v726_v2 = vpop.permute.xlu0 %725 }
 0xeaf   :  { %v728_v4 = vmul.f32 %v726_v2, %v720_v3 }
 0xeb1   :  { %730 = vrot.lane.b32.xlu1 %v728_v4, %s1122_s24 }
 0xeb9   :  { %136 = vrot.lane.b32.xlu1 %v1166_v28, %s1122_s24 }
 0xf23   :  { %v731_v6 = vpop.permute.xlu1 %730 }
 0xf24   :  { %v1221_v7 = vadd.f32 %v731_v6, %v723_v5 }
 0xf26   :  { %988 = vtanh.f32 %v1221_v7 }
 0xf27   :  { %990 = vrcp.f32 %v1126_v15 }
 0xf2b   :  { %v137_v9 = vpop.permute.xlu1 %136 }
 0xf2c   :  { %v989_v8 = vpop.eup %988  ;;  %v140_v10 = vsel %vm139_vm14, %v137_v9, 0.0 }
 0xf2d   :  { %736 = vrot.lane.b32.xlu2 %v989_v8, %s1119_s20  ;;  %v991_v16 = vpop.eup %990 }
 0xf2e   :  { %v144_v17 = vmul.f32 32.0, %v991_v16  ;;  %vm148_vm15 = vweird.f32 %v991_v16 }
 0xf30   :  { %v145_v18 = vsub.f32 1.0, %v144_v17 }
 0xf32   :  { %v146_v19 = vmul.f32 %v991_v16, %v145_v18 }
 0xf34   :  { %v147_v21 = vadd.f32 %v991_v16, %v146_v19 }
 0xf36   :  { %v1233_v22 = vsel %vm148_vm15, %v991_v16, %v147_v21 }
 0xf56   :  { %141 = vadd.xlane.f32.xlu2 %v140_v10 }
 0xf6e   :  { %251 = vrot.lane.b32.xlu2 %v1175_v56, %s1122_s24 }
 0xf87   :  { %v737_v11 = vpop.permute.xlu2 %736 }
 0xf88   :  { %v1228_v12 = vmul.f32 %v737_v11, %v720_v3 }
 0xf8a   :  { %v780_v13 = vpack.c.bf16 %v1228_v12, %v1228_v12 }
 0xf8c   :  { %782 = vrot.lane.b32.xlu0 %v780_v13, %s1122_s24 }
 0xfc9   :  { %v142_v23 = vpop.xlane.xlu2 %141 }
 0xfca   :  { %v150_v24 = vmul.f32 %v1233_v22, %v142_v23 }
 0xfcc   :  { %v151_v25 = vsub.f32 %v1166_v28, %v150_v24 }
 0xfce   :  { %v152_v26 = vmul.f32 %v151_v25, %v151_v25 }
 0xfd0   :  { %154 = vrot.lane.b32.xlu1 %v152_v26, %s1122_s24 }
 0xfd1   :  { %v252_v6 = vpop.permute.xlu2 %251 }
 0xfd2   :  { %v254_v8 = vsel %vm139_vm14, %v252_v6, 0.0 }
 0xfd8   :  { %175 = vrot.lane.b32.xlu1 %v932_v34, %s1127_s2 }
 0xfe0   :  { %181 = vrot.lane.b32.xlu1 %v933_v35, %s1127_s2 }
 0xffe   :  { %v783_v27 = vpop.permute.xlu0 %782 }
 0xfff   :  { %917 = vmatmul.msk.bf16.vlgmr.msrb.gmra.mxu3 %vm80_vm4, %v783_v27 }
0x1042   :  { %v155_v28 = vpop.permute.xlu1 %154 }
0x1043   :  { %v157_v36 = vsel %vm139_vm14, %v155_v28, 0.0 }
0x104a   :  { %v1242_v50 = vpop.permute.xlu1 %175 }
0x1052   :  { %v1244_v60 = vpop.permute.xlu1 %181 }
0x1082   :  { %v796_v30 = vpop.f32.mrf.mxu3 }
0x1083   :  { %v800_v31 = vadd.f32 %v796_v30, %v779_v29 }
0x1085   :  { %992 = vtanh.f32 %v800_v31  ;;  %v918_v37 = vmul.f32 -1.442695, %v800_v31 }
0x1087   :  { %994 = vpow2.f32 %v918_v37 }
0x108a   :  { %v798_v32 = vpop.f32.mrf.mxu3 }
0x108b   :  { %v993_v33 = vpop.eup %992 }
0x108c   :  { %823 = vrot.lane.b32.xlu0 %v993_v33, %s1119_s20 }
0x108d   :  { %v995_v39 = vpop.eup %994 }
0x108e   :  { %v804_v42 = vadd.f32 1.0, %v995_v39 }
0x1090   :  { %v816_v0 = vand.u32 2147483648, %v804_v42  ;;  %vm810_vm3 = vweird.f32 %v804_v42  ;;  %v814_v1 = vand.u32 2147483647, %v804_v42 }
0x1092   :  { %v817_v3 = vor.u32 1.1754944e-38, %v816_v0  ;;  %vm815_vm6 = vcmp.eq.f32.partialorder %v814_v1, 8.507059e+37 }
0x10b6   :  { %158 = vadd.xlane.f32.xlu0 %v157_v36 }
0x10fe   :  { %v824_v38 = vpop.permute.xlu0 %823 }
0x1129   :  { %v159_v40 = vpop.xlane.xlu0 %158 }
0x112a   :  { %v160_v41 = vmul.f32 %v159_v40, %v1233_v22 }
0x112c   :  { %v161_v43 = vadd.f32 1e-05, %v160_v41 }
0x112e   :  { %996 = vrsqrt.f32 %v161_v43  ;;  %vm168_vm0 = vweird.f32 %v161_v43 }
0x112f   :  { %998 = vrcp.f32 %v804_v42 }
0x1134   :  { %v997_v45 = vpop.eup %996 }
0x1135   :  { %v999_v46 = vpop.eup %998  ;;  %v163_v47 = vmul.f32 %v997_v45, %v161_v43  ;;  %vm169_vm4 = vweird.f32 %v997_v45 }
0x1136   :  { %v806_v51 = vmul.f32 %v999_v46, %v804_v42  ;;  %vm170_vm1 = vmor %vm168_vm0, %vm169_vm4  ;;  %vm811_vm2 = vweird.f32 %v999_v46 }
0x1137   :  { %v164_v48 = vmul.f32 %v997_v45, %v163_v47  ;;  %vm812_vm5 = vmor %vm810_vm3, %vm811_vm2 }
0x1138   :  { %v807_v54 = vsub.f32 1.0, %v806_v51 }
0x1139   :  { %v165_v52 = vmul.f32 0.5, %v164_v48 }
0x113a   :  { %v808_v58 = vmul.f32 %v999_v46, %v807_v54 }
0x113b   :  { %v166_v53 = vsub.f32 1.5, %v165_v52 }
0x113c   :  { %v809_v62 = vadd.f32 %v999_v46, %v808_v58 }
0x113d   :  { %v167_v55 = vmul.f32 %v997_v45, %v166_v53 }
0x113e   :  { %v813_v2 = vsel %vm812_vm5, %v999_v46, %v809_v62 }
0x113f   :  { %v171_v57 = vsel %vm170_vm1, %v997_v45, %v167_v55  ;;  %v818_v4 = vsel %vm815_vm6, %v817_v3, %v813_v2 }
0x1140   :  { %v172_v59 = vmul.f32 %v171_v57, %v151_v25  ;;  %v826_v5 = vmul.f32 %v824_v38, %v818_v4  ;;  %v821_v32 = vmul.f32 %v818_v4, %v1221_v7 }
0x1142   :  { %v178_v61 = vmul.f32 %v1242_v50, %v172_v59 }
0x1144   :  { %v184_v63 = vadd.f32 %v1244_v60, %v178_v61 }
0x1146   :  { %186 = vrot.lane.b32.xlu1 %v184_v63, %s1122_s24 }
0x114e   :  { %828 = vrot.lane.b32.xlu1 %v826_v5, %s1122_s24 }
0x1178   :  { %255 = vadd.xlane.f32.xlu1 %v254_v8 }
0x1191   :  { %349 = vrot.lane.b32.xlu1 %v1184_v20, %s1122_s24 }
0x11b8   :  { %v187_v9 = vpop.permute.xlu1 %186 }
0x11b9   :  { %189 = vst.msk [vmem:[#allocation8] sm:$0x3] %vm139_vm14, %v187_v9 }
0x11c0   :  { %v829_v10 = vpop.permute.xlu1 %828 }
0x11c1   :  { %v831_v34 = vadd.f32 %v829_v10, %v821_v32 }
0x11eb   :  { %v256_v11 = vpop.xlane.xlu1 %255 }
0x11ec   :  { %v257_v13 = vmul.f32 %v256_v11, %v1233_v22 }
0x11ee   :  { %v258_v15 = vsub.f32 %v1175_v56, %v257_v13 }
0x11f0   :  { %v259_v16 = vmul.f32 %v258_v15, %v258_v15 }
0x11f2   :  { %261 = vrot.lane.b32.xlu0 %v259_v16, %s1122_s24 }
0x1203   :  { %v350_v36 = vpop.permute.xlu1 %349 }
0x1204   :  { %v352_v37 = vsel %vm139_vm14, %v350_v36, 0.0 }
0x1264   :  { %v262_v17 = vpop.permute.xlu0 %261 }
0x1265   :  { %v264_v18 = vsel %vm139_vm14, %v262_v17, 0.0 }
0x1266   :  { %265 = vadd.xlane.f32.xlu2 %v264_v18 }
0x12d9   :  { %v266_v19 = vpop.xlane.xlu2 %265 }
0x12da   :  { %v267_v21 = vmul.f32 %v266_v19, %v1233_v22 }
0x12dc   :  { %v268_v23 = vadd.f32 1e-05, %v267_v21 }
0x12de   :  { %1000 = vrsqrt.f32 %v268_v23  ;;  %vm275_vm8 = vweird.f32 %v268_v23 }
0x12df   :  { %1002 = vtanh.f32 %v831_v34 }
0x12e4   :  { %v1001_v24 = vpop.eup %1000 }
0x12e5   :  { %v270_v25 = vmul.f32 %v1001_v24, %v268_v23  ;;  %vm276_vm7 = vweird.f32 %v1001_v24  ;;  %v1003_v28 = vpop.eup %1002 }
0x12e6   :  { %vm277_vm9 = vmor %vm275_vm8, %vm276_vm7 }
0x12e7   :  { %v271_v26 = vmul.f32 %v1001_v24, %v270_v25 }
0x12e9   :  { %v272_v27 = vmul.f32 0.5, %v271_v26 }
0x12eb   :  { %v273_v29 = vsub.f32 1.5, %v272_v27 }
0x12ed   :  { %v274_v30 = vmul.f32 %v1001_v24, %v273_v29 }
0x12ef   :  { %v278_v56 = vsel %vm277_vm9, %v1001_v24, %v274_v30 }
0x12f0   :  { %v279_v31 = vmul.f32 %v278_v56, %v258_v15 }
0x12f2   :  { %v280_v33 = vmul.f32 %v279_v31, %v1242_v50 }
0x12f4   :  { %v281_v35 = vadd.f32 %v280_v33, %v1244_v60 }
0x12f6   :  { %283 = vrot.lane.b32.xlu0 %v281_v35, %s1122_s24 }
0x12fe   :  { %834 = vrot.lane.b32.xlu0 %v1003_v28, %s1119_s20 }
0x1328   :  { %353 = vadd.xlane.f32.xlu0 %v352_v37 }
0x133c   :  { %545 = vrot.lane.b32.xlu0 %v1202_v14, %s1122_s24 }
0x1368   :  { %v284_v38 = vpop.permute.xlu0 %283 }
0x1369   :  { %287 = vst.msk [vmem:[#allocation8 + $0x2] sm:$0x3] %vm139_vm14, %v284_v38 }
0x1370   :  { %v835_v7 = vpop.permute.xlu0 %834 }
0x1371   :  { %v1277_v43 = vmul.f32 %v835_v7, %v818_v4 }
0x139b   :  { %v354_v39 = vpop.xlane.xlu0 %353 }
0x139c   :  { %v355_v40 = vmul.f32 %v354_v39, %v1233_v22 }
0x139e   :  { %v356_v41 = vsub.f32 %v1184_v20, %v355_v40 }
0x13a0   :  { %v357_v42 = vmul.f32 %v356_v41, %v356_v41 }
0x13a2   :  { %359 = vrot.lane.b32.xlu2 %v357_v42, %s1122_s24 }
0x13aa   :  { %447 = vrot.lane.b32.xlu2 %v1193_v49, %s1122_s24 }
0x13ae   :  { %v546_v9 = vpop.permute.xlu0 %545 }
0x13af   :  { %v548_v10 = vsel %vm139_vm14, %v546_v9, 0.0 }
0x13b2   :  { %643 = vrot.lane.b32.xlu2 %v1211_v44, %s1122_s24 }
0x13ba   :  { %741 = vrot.lane.b32.xlu2 %v1228_v12, %s1122_s24 }
0x13c2   :  { %839 = vrot.lane.b32.xlu2 %v1277_v43, %s1122_s24 }
0x13fc   :  { %v360_v45 = vpop.permute.xlu2 %359 }
0x13fd   :  { %v362_v20 = vsel %vm139_vm14, %v360_v45, 0.0 }
0x13fe   :  { %363 = vadd.xlane.f32.xlu1 %v362_v20 }
0x1404   :  { %v448_v46 = vpop.permute.xlu2 %447 }
0x1405   :  { %v450_v47 = vsel %vm139_vm14, %v448_v46, 0.0 }
0x1406   :  { %451 = vadd.xlane.f32.xlu1 %v450_v47 }
0x140c   :  { %v644_v48 = vpop.permute.xlu2 %643 }
0x140d   :  { %v646_v51 = vsel %vm139_vm14, %v644_v48, 0.0 }
0x140e   :  { %647 = vadd.xlane.f32.xlu1 %v646_v51 }
0x1471   :  { %v364_v52 = vpop.xlane.xlu1 %363 }
0x1472   :  { %v365_v53 = vmul.f32 %v364_v52, %v1233_v22 }
0x1474   :  { %v366_v54 = vadd.f32 1e-05, %v365_v53 }
0x1476   :  { %1004 = vrsqrt.f32 %v366_v54  ;;  %vm373_vm11 = vweird.f32 %v366_v54 }
0x1479   :  { %v452_v55 = vpop.xlane.xlu1 %451 }
0x147a   :  { %v453_v57 = vmul.f32 %v452_v55, %v1233_v22 }
0x147c   :  { %v1005_v58 = vpop.eup %1004  ;;  %v454_v59 = vsub.f32 %v1193_v49, %v453_v57  ;;  %v742_v49 = vpop.permute.xlu2 %741 }
0x147d   :  { %v368_v61 = vmul.f32 %v1005_v58, %v366_v54  ;;  %vm374_vm10 = vweird.f32 %v1005_v58  ;;  %v744_v8 = vsel %vm139_vm14, %v742_v49, 0.0 }
0x147e   :  { %v455_v62 = vmul.f32 %v454_v59, %v454_v59  ;;  %vm375_vm12 = vmor %vm373_vm11, %vm374_vm10 }
0x147f   :  { %v369_v63 = vmul.f32 %v1005_v58, %v368_v61 }
0x1480   :  { %457 = vrot.lane.b32.xlu2 %v455_v62, %s1122_s24 }
0x1481   :  { %v370_v0 = vmul.f32 0.5, %v369_v63  ;;  %v648_v23 = vpop.xlane.xlu1 %647 }
0x1482   :  { %v649_v37 = vmul.f32 %v648_v23, %v1233_v22 }
0x1483   :  { %v371_v1 = vsub.f32 1.5, %v370_v0 }
0x1484   :  { %v840_v11 = vpop.permute.xlu2 %839  ;;  %v650_v7 = vsub.f32 %v1211_v44, %v649_v37 }
0x1485   :  { %v372_v2 = vmul.f32 %v1005_v58, %v371_v1  ;;  %v842_v28 = vsel %vm139_vm14, %v840_v11, 0.0 }
0x1486   :  { %v651_v39 = vmul.f32 %v650_v7, %v650_v7 }
0x1487   :  { %v376_v3 = vsel %vm375_vm12, %v1005_v58, %v372_v2 }
0x1488   :  { %v377_v4 = vmul.f32 %v376_v3, %v356_v41 }
0x148a   :  { %v378_v5 = vmul.f32 %v377_v4, %v1242_v50 }
0x148c   :  { %v379_v6 = vadd.f32 %v378_v5, %v1244_v60 }
0x148e   :  { %381 = vrot.lane.b32.xlu0 %v379_v6, %s1122_s24 }
0x14a9   :  { %745 = vadd.xlane.f32.xlu2 %v744_v8 }
0x14b8   :  { %549 = vadd.xlane.f32.xlu0 %v548_v10 }
0x14da   :  { %v458_v13 = vpop.permute.xlu2 %457 }
0x14db   :  { %v460_v15 = vsel %vm139_vm14, %v458_v13, 0.0 }
0x14dc   :  { %461 = vadd.xlane.f32.xlu1 %v460_v15 }
0x1500   :  { %v382_v16 = vpop.permute.xlu0 %381 }
0x1501   :  { %385 = vst.msk [vmem:[#allocation8 + $0x4] sm:$0x3] %vm139_vm14, %v382_v16 }
0x151c   :  { %v746_v40 = vpop.xlane.xlu2 %745 }
0x151d   :  { %v747_v41 = vmul.f32 %v746_v40, %v1233_v22 }
0x151f   :  { %v1309_v42 = vsub.f32 %v1228_v12, %v747_v41 }
0x1521   :  { %v749_v45 = vmul.f32 %v1309_v42, %v1309_v42 }
0x152b   :  { %v550_v17 = vpop.xlane.xlu0 %549 }
0x152c   :  { %v551_v18 = vmul.f32 %v550_v17, %v1233_v22 }
0x152e   :  { %v552_v19 = vsub.f32 %v1202_v14, %v551_v18 }
0x1530   :  { %v553_v21 = vmul.f32 %v552_v19, %v552_v19 }
0x1532   :  { %555 = vrot.lane.b32.xlu0 %v553_v21, %s1122_s24 }
0x154f   :  { %v462_v24 = vpop.xlane.xlu1 %461 }
0x1550   :  { %v463_v25 = vmul.f32 %v462_v24, %v1233_v22 }
0x1552   :  { %v464_v26 = vadd.f32 1e-05, %v463_v25 }
0x1554   :  { %1006 = vrsqrt.f32 %v464_v26  ;;  %vm471_vm15 = vweird.f32 %v464_v26 }
0x155a   :  { %v1007_v27 = vpop.eup %1006 }
0x155b   :  { %v466_v29 = vmul.f32 %v1007_v27, %v464_v26  ;;  %vm472_vm13 = vweird.f32 %v1007_v27 }
0x155c   :  { %vm473_vm4 = vmor %vm471_vm15, %vm472_vm13 }
0x155d   :  { %v467_v30 = vmul.f32 %v1007_v27, %v466_v29 }
0x155f   :  { %v468_v56 = vmul.f32 0.5, %v467_v30 }
0x1561   :  { %v469_v31 = vsub.f32 1.5, %v468_v56 }
0x1563   :  { %v470_v32 = vmul.f32 %v1007_v27, %v469_v31 }
0x1565   :  { %v474_v33 = vsel %vm473_vm4, %v1007_v27, %v470_v32 }
0x1566   :  { %v475_v14 = vmul.f32 %v474_v33, %v454_v59 }
0x1568   :  { %v476_v34 = vmul.f32 %v475_v14, %v1242_v50 }
0x156a   :  { %v477_v35 = vadd.f32 %v476_v34, %v1244_v60 }
0x156c   :  { %479 = vrot.lane.b32.xlu1 %v477_v35, %s1122_s24 }
0x1596   :  { %843 = vadd.xlane.f32.xlu1 %v842_v28 }
0x15a4   :  { %v556_v36 = vpop.permute.xlu0 %555 }
0x15a5   :  { %v558_v38 = vsel %vm139_vm14, %v556_v36, 0.0 }
0x15a6   :  { %559 = vadd.xlane.f32.xlu2 %v558_v38 }
0x15af   :  { %653 = vrot.lane.b32.xlu1 %v651_v39, %s1122_s24 }
0x15be   :  { %751 = vrot.lane.b32.xlu2 %v749_v45, %s1122_s24 }
0x15de   :  { %v480_v20 = vpop.permute.xlu1 %479 }
0x15df   :  { %483 = vst.msk [vmem:[#allocation8 + $0x6] sm:$0x3] %vm139_vm14, %v480_v20 }
0x1609   :  { %v844_v46 = vpop.xlane.xlu1 %843 }
0x160a   :  { %v845_v44 = vmul.f32 %v844_v46, %v1233_v22 }
0x160c   :  { %v1317_v47 = vsub.f32 %v1277_v43, %v845_v44 }
0x160e   :  { %v847_v48 = vmul.f32 %v1317_v47, %v1317_v47 }
0x1610   :  { %849 = vrot.lane.b32.xlu1 %v847_v48, %s1122_s24 }
0x1619   :  { %v560_v12 = vpop.xlane.xlu2 %559 }
0x161a   :  { %v561_v51 = vmul.f32 %v560_v12, %v1233_v22 }
0x161c   :  { %v562_v52 = vadd.f32 1e-05, %v561_v51 }
0x161e   :  { %1008 = vrsqrt.f32 %v562_v52  ;;  %vm569_vm1 = vweird.f32 %v562_v52 }
0x1621   :  { %v654_v0 = vpop.permute.xlu1 %653  ;;  %v752_v21 = vpop.permute.xlu2 %751 }
0x1622   :  { %v656_v1 = vsel %vm139_vm14, %v654_v0, 0.0  ;;  %v754_v23 = vsel %vm139_vm14, %v752_v21, 0.0 }
0x1624   :  { %v1009_v53 = vpop.eup %1008 }
0x1625   :  { %v564_v54 = vmul.f32 %v1009_v53, %v562_v52  ;;  %vm570_vm0 = vweird.f32 %v1009_v53 }
0x1626   :  { %vm571_vm2 = vmor %vm569_vm1, %vm570_vm0 }
0x1627   :  { %v565_v55 = vmul.f32 %v1009_v53, %v564_v54 }
0x1629   :  { %v566_v57 = vmul.f32 0.5, %v565_v55 }
0x162b   :  { %v567_v58 = vsub.f32 1.5, %v566_v57 }
0x162d   :  { %v568_v59 = vmul.f32 %v1009_v53, %v567_v58 }
0x162f   :  { %v572_v43 = vsel %vm571_vm2, %v1009_v53, %v568_v59 }
0x1630   :  { %v573_v61 = vmul.f32 %v572_v43, %v552_v19 }
0x1632   :  { %v574_v62 = vmul.f32 %v573_v61, %v1242_v50 }
0x1634   :  { %v575_v63 = vadd.f32 %v574_v62, %v1244_v60 }
0x1636   :  { %577 = vrot.lane.b32.xlu0 %v575_v63, %s1122_s24 }
0x163a   :  { %657 = vadd.xlane.f32.xlu1 %v656_v1 }
0x1682   :  { %v850_v2 = vpop.permute.xlu1 %849 }
0x1683   :  { %v852_v3 = vsel %vm139_vm14, %v850_v2, 0.0 }
0x1684   :  { %853 = vadd.xlane.f32.xlu2 %v852_v3 }
0x16a8   :  { %v578_v4 = vpop.permute.xlu0 %577 }
0x16a9   :  { %581 = vst.msk [vmem:[#allocation8 + $0x8] sm:$0x3] %vm139_vm14, %v578_v4 }
0x16ad   :  { %v658_v5 = vpop.xlane.xlu1 %657 }
0x16ae   :  { %v659_v6 = vmul.f32 %v658_v5, %v1233_v22 }
0x16b0   :  { %v660_v49 = vadd.f32 1e-05, %v659_v6 }
0x16b2   :  { %1010 = vrsqrt.f32 %v660_v49  ;;  %vm667_vm5 = vweird.f32 %v660_v49 }
0x16b8   :  { %v1011_v8 = vpop.eup %1010 }
0x16b9   :  { %v662_v9 = vmul.f32 %v1011_v8, %v660_v49  ;;  %vm668_vm3 = vweird.f32 %v1011_v8 }
0x16ba   :  { %vm669_vm6 = vmor %vm667_vm5, %vm668_vm3 }
0x16bb   :  { %v663_v10 = vmul.f32 %v1011_v8, %v662_v9 }
0x16bd   :  { %v664_v11 = vmul.f32 0.5, %v663_v10 }
0x16bf   :  { %v665_v13 = vsub.f32 1.5, %v664_v11 }
0x16c1   :  { %v666_v15 = vmul.f32 %v1011_v8, %v665_v13 }
0x16c3   :  { %v670_v16 = vsel %vm669_vm6, %v1011_v8, %v666_v15 }
0x16c4   :  { %v671_v17 = vmul.f32 %v670_v16, %v650_v7 }
0x16c6   :  { %v672_v18 = vmul.f32 %v671_v17, %v1242_v50 }
0x16c8   :  { %v673_v19 = vadd.f32 %v672_v18, %v1244_v60 }
0x16ca   :  { %675 = vrot.lane.b32.xlu0 %v673_v19, %s1122_s24 }
0x16f4   :  { %755 = vadd.xlane.f32.xlu0 %v754_v23 }
0x16f7   :  { %v854_v24 = vpop.xlane.xlu2 %853 }
0x16f8   :  { %v855_v25 = vmul.f32 %v854_v24, %v1233_v22 }
0x16fa   :  { %v856_v26 = vadd.f32 1e-05, %v855_v25 }
0x16fc   :  { %1012 = vrsqrt.f32 %v856_v26  ;;  %vm863_vm8 = vweird.f32 %v856_v26 }
0x1702   :  { %v1013_v27 = vpop.eup %1012 }
0x1703   :  { %v858_v29 = vmul.f32 %v1013_v27, %v856_v26  ;;  %vm864_vm7 = vweird.f32 %v1013_v27 }
0x1704   :  { %vm865_vm9 = vmor %vm863_vm8, %vm864_vm7 }
0x1705   :  { %v859_v30 = vmul.f32 %v1013_v27, %v858_v29 }
0x1707   :  { %v860_v56 = vmul.f32 0.5, %v859_v30 }
0x1709   :  { %v861_v31 = vsub.f32 1.5, %v860_v56 }
0x170b   :  { %v862_v32 = vmul.f32 %v1013_v27, %v861_v31 }
0x170d   :  { %v866_v33 = vsel %vm865_vm9, %v1013_v27, %v862_v32 }
0x170e   :  { %v867_v14 = vmul.f32 %v866_v33, %v1317_v47 }
0x1710   :  { %v868_v34 = vmul.f32 %v867_v14, %v1242_v50 }
0x1712   :  { %v869_v35 = vadd.f32 %v868_v34, %v1244_v60 }
0x1714   :  { %871 = vrot.lane.b32.xlu0 %v869_v35, %s1122_s24 }
0x173c   :  { %v676_v28 = vpop.permute.xlu0 %675 }
0x173d   :  { %679 = vst.msk [vmem:[#allocation8 + $0xa] sm:$0x3] %vm139_vm14, %v676_v28 }
0x1767   :  { %v756_v36 = vpop.xlane.xlu0 %755 }
0x1768   :  { %v757_v37 = vmul.f32 %v756_v36, %v1233_v22 }
0x176a   :  { %v758_v38 = vadd.f32 1e-05, %v757_v37 }
0x176c   :  { %1014 = vrsqrt.f32 %v758_v38  ;;  %vm765_vm11 = vweird.f32 %v758_v38 }
0x1772   :  { %v1015_v7 = vpop.eup %1014 }
0x1773   :  { %v760_v39 = vmul.f32 %v1015_v7, %v758_v38  ;;  %vm766_vm10 = vweird.f32 %v1015_v7 }
0x1774   :  { %vm767_vm12 = vmor %vm765_vm11, %vm766_vm10 }
0x1775   :  { %v761_v40 = vmul.f32 %v1015_v7, %v760_v39 }
0x1777   :  { %v762_v41 = vmul.f32 0.5, %v761_v40 }
0x1779   :  { %v763_v45 = vsub.f32 1.5, %v762_v41 }
0x177b   :  { %v764_v20 = vmul.f32 %v1015_v7, %v763_v45 }
0x177d   :  { %v768_v46 = vsel %vm767_vm12, %v1015_v7, %v764_v20 }
0x177e   :  { %v769_v44 = vmul.f32 %v768_v46, %v1309_v42 }
0x1780   :  { %v770_v47 = vmul.f32 %v769_v44, %v1242_v50 }
0x1782   :  { %v771_v48 = vadd.f32 %v770_v47, %v1244_v60 }
0x1784   :  { %773 = vrot.lane.b32.xlu1 %v771_v48, %s1122_s24 }
0x1786   :  { %v872_v22 = vpop.permute.xlu0 %871 }
0x1787   :  { %875 = vst.msk [vmem:[#allocation8 + $0xe] sm:$0x3] %vm139_vm14, %v872_v22 }
0x17f6   :  { %v774_v12 = vpop.permute.xlu1 %773 }
0x17f7   :  { %777 = vst.msk [vmem:[#allocation8 + $0xc] sm:$0x3] %vm139_vm14, %v774_v12 }
0x17f8   :  { %888 = dma.vmem_to_hbm [thread:$0]  %s881_s30, 256, %s883_s6, [#allocation4], %s1122_s24, %s1122_s24, %s1123_s1  }
0x17f9   :  { %1116 = dma.done.wait [#allocation4], 256  }
0x17fa   :  { %1117 = vsyncadd [#allocation4], 4294967040 }
0x17fb   :  { %893 = vsyncpa [#allocation3], 1 }
0x17fc   :  { %894 = vsyncpa [#allocation6], 1 }
0x17fd   :  { %895 = vsyncpa [#allocation4], 1 }

</bundles_post_ra>
